<compile_context>
chip_gen: v7x
topology: tpu7x:2x2x1
jax: 0.10.0
libtpu: 0.0.40
codegen_flags: <defaults>
</compile_context>

<pallas_src>
import functools
import math

import numpy as np
import jax
import jax.numpy as jnp
from jax import lax
from jax.experimental import pallas as pl
from jax.experimental.pallas import tpu as pltpu


# ----------------------------------------------------------------------------
# Fused AutoCorrelation kernel (one grid step per batch element)
# ----------------------------------------------------------------------------
def _autocorr_kernel(q_ref, k_ref, v_ref, o_ref, kd_ref, vd_ref, *, seq_len, top_k):
    L = seq_len
    q = q_ref[0].astype(jnp.float32)          # (L, C)   C = H*E
    k = k_ref[0].astype(jnp.float32)          # (L, C)
    v = v_ref[0].astype(jnp.float32)          # (L, Cv)  Cv = H*D
    C = q.shape[1]

    # Doubled copies in VMEM scratch -> circular indexing via static slices (no mod / gather).
    kd_ref[0:L, :] = k
    kd_ref[L:2 * L, :] = k
    vd_ref[0:L, :] = v
    vd_ref[L:2 * L, :] = v

    # ---- (1) period-based dependency discovery --------------------------------------------
    # mean_value[tau] = (1 / C) * sum_{t,c} q[t, c] * k[(t - tau) mod L, c]
    # (head/channel mean of irfft(rfft(q) * conj(rfft(k))); the full corr tensor is not needed
    #  for the inference-mode aggregation, so it is never built.)
    lane_iota = lax.broadcasted_iota(jnp.int32, (1, L), 1)
    iota_f = lane_iota.astype(jnp.float32)
    mv = jnp.zeros((1, L), jnp.float32)
    for tau in range(L):                                   # static loop (L is compile-time)
        win = kd_ref[L - tau:2 * L - tau, :].astype(jnp.float32)   # rows k[(t - tau) % L]
        s = jnp.sum(q * win, axis=1, keepdims=True)        # (L, 1) lane reduce
        s = jnp.sum(s, axis=0, keepdims=True)              # (1, 1) sublane reduce
        mv = mv + s * (lane_iota == tau).astype(jnp.float32)
    mv = mv * (1.0 / C)

    # ---- (2) top-k delay selection + softmax over the selected weights ---------------------
    # Iterative in-register argmax (smallest index on ties); everything stays in vector regs,
    # so no vector->scalar extraction is required.
    neg = jnp.float32(-1e30)
    work = mv
    sel = jnp.zeros((1, L), jnp.bool_)
    for _ in range(top_k):                                 # static loop (top_k is compile-time)
        m = jnp.max(work, axis=1, keepdims=True)           # (1, 1)
        is_max = work >= m
        idx = jnp.min(jnp.where(is_max, iota_f, jnp.float32(L)), axis=1, keepdims=True)
        pick = iota_f == idx
        sel = jnp.logical_or(sel, pick)
        work = jnp.where(pick, neg, work)

    w = jnp.where(sel, mv, neg)
    wmax = jnp.max(w, axis=1, keepdims=True)
    e = jnp.exp(w - wmax) * sel.astype(jnp.float32)        # exactly zero off the top-k delays
    denom = jnp.sum(e, axis=1, keepdims=True)
    coef = e * pl.reciprocal(denom)                        # (1, L) sparse softmax coefficients

    # ---- (3) time-delay aggregation ---------------------------------------------------------
    # out[t, :] = sum_tau coef[tau] * v[(t + tau) mod L, :]
    # TODO(synk): for large L, split top-k out (scalar-prefetch + pl.ds dynamic slices) so the
    #             aggregation is O(top_k * L * Cv) instead of this dense O(L^2 * Cv) form.
    acc = jnp.zeros_like(v)
    for tau in range(L):                                   # static loop; zero-weight taus add 0
        wgt = coef[0:1, tau:tau + 1]                       # (1, 1)
        acc = acc + wgt * vd_ref[tau:tau + L, :].astype(jnp.float32)

    o_ref[0] = acc.astype(o_ref.dtype)


# ----------------------------------------------------------------------------
# Wrapper: length adjust (L vs S) + channel flatten + pallas_call
# ----------------------------------------------------------------------------
def auto_correlation(queries, keys, values, attn_mask=None, *, factor=1):
    """queries (B, L, H, E); keys (B, S, H, E); values (B, S, H, D) -> (V (B, L, H, D), None)."""
    del attn_mask  # not used by the PyTorch forward either
    B, L, H, E = queries.shape
    _, S, _, D = values.shape

    # Length adjust exactly as in the PyTorch forward (zero-pad or truncate keys/values to L).
    if L > S:
        keys = jnp.concatenate([keys, jnp.zeros((B, L - S, H, E), keys.dtype)], axis=1)
        values = jnp.concatenate([values, jnp.zeros((B, L - S, H, D), values.dtype)], axis=1)
    else:
        keys = keys[:, :L]
        values = values[:, :L]

    C, Cv = H * E, H * D
    q2 = queries.reshape(B, L, C)
    k2 = keys.reshape(B, L, C)
    v2 = values.reshape(B, L, Cv)

    top_k = max(1, min(L, int(factor * math.log(L))))

    out = pl.pallas_call(
        functools.partial(_autocorr_kernel, seq_len=L, top_k=top_k),
        out_shape=jax.ShapeDtypeStruct((B, L, Cv), values.dtype),
        grid=(B,),
        in_specs=[pl.BlockSpec((1, L, C), lambda b: (b, 0, 0)),
                  pl.BlockSpec((1, L, C), lambda b: (b, 0, 0)),
                  pl.BlockSpec((1, L, Cv), lambda b: (b, 0, 0))],
        out_specs=pl.BlockSpec((1, L, Cv), lambda b: (b, 0, 0)),
        scratch_shapes=[pltpu.VMEM((2 * L, C), jnp.float32),
                        pltpu.VMEM((2 * L, Cv), jnp.float32)],
        compiler_params=pltpu.CompilerParams(dimension_semantics=("parallel",)),
    )(q2, k2, v2)

    # output_attention=False path of the PyTorch module.
    # TODO(synk): output_attention=True would require materialising the full (B,H,E,L) corr.
    return out.reshape(B, L, H, D), None


# ----------------------------------------------------------------------------
# Pure-JAX reference mirroring the PyTorch forward (FFT + gather), eval mode
# ----------------------------------------------------------------------------
def _ref_autocorrelation(queries, keys, values, *, factor=1):
    B, L, H, E = queries.shape
    _, S, _, D = values.shape
    if L > S:
        keys = jnp.concatenate([keys, jnp.zeros((B, L - S, H, E), keys.dtype)], axis=1)
        values = jnp.concatenate([values, jnp.zeros((B, L - S, H, D), values.dtype)], axis=1)
    else:
        keys = keys[:, :L]
        values = values[:, :L]

    q_t = jnp.transpose(queries, (0, 2, 3, 1))             # (B, H, E, L)
    k_t = jnp.transpose(keys, (0, 2, 3, 1))
    v_t = jnp.transpose(values, (0, 2, 3, 1))              # (B, H, D, L)

    q_fft = jnp.fft.rfft(q_t, axis=-1)
    k_fft = jnp.fft.rfft(k_t, axis=-1)
    corr = jnp.fft.irfft(q_fft * jnp.conj(k_fft), n=L, axis=-1)     # (B, H, E, L)

    mean_value = corr.mean(axis=1).mean(axis=1)            # (B, L)
    top_k = max(1, min(L, int(factor * math.log(L))))
    weights, delay = lax.top_k(mean_value, top_k)          # (B, k)
    tmp_corr = jax.nn.softmax(weights, axis=-1)

    v_double = jnp.concatenate([v_t, v_t], axis=-1)        # (B, H, D, 2L)
    init_index = jnp.arange(L)
    agg = jnp.zeros_like(v_t)
    for i in range(top_k):
        idx = init_index[None, :] + delay[:, i][:, None]                     # (B, L)
        idx = jnp.broadcast_to(idx[:, None, None, :], v_t.shape)             # (B, H, D, L)
        pattern = jnp.take_along_axis(v_double, idx, axis=-1)
        agg = agg + pattern * tmp_corr[:, i][:, None, None, None]
    return jnp.transpose(agg, (0, 3, 1, 2))                # (B, L, H, D)


if __name__ == "__main__":
    B, L, S, H, E, D = 2, 16, 24, 4, 8, 8    # L < S exercises the keys/values truncation path

    key = jax.random.PRNGKey(0)
    kq, kk, kv = jax.random.split(key, 3)
    queries = jax.random.normal(kq, (B, L, H, E), jnp.float32)
    keys = jax.random.normal(kk, (B, S, H, E), jnp.float32)
    values = jax.random.normal(kv, (B, S, H, D), jnp.float32)

    out, _ = auto_correlation(queries, keys, values, attn_mask=None, factor=1)
    out = jax.block_until_ready(out)

    ref = _ref_autocorrelation(queries, keys, values, factor=1)
    np.testing.assert_allclose(np.asarray(out), np.asarray(ref), rtol=1e-3, atol=1e-3)

    print("KERNEL_OK")
</pallas_src>

<mosaic_0001>
module attributes {stable_mosaic.version = 11 : i64} {
  func.func @_autocorr_kernel(%arg0: i32, %arg1: memref<1x16x32xf32, #tpu.memory_space<vmem>>, %arg2: memref<1x16x32xf32, #tpu.memory_space<vmem>>, %arg3: memref<1x16x32xf32, #tpu.memory_space<vmem>>, %arg4: memref<1x16x32xf32, #tpu.memory_space<vmem>>, %arg5: memref<32x32xf32, #tpu.memory_space<vmem>>, %arg6: memref<32x32xf32, #tpu.memory_space<vmem>>) attributes {dimension_semantics = [#tpu.dimension_semantics<parallel>], iteration_bounds = array<i64: 2>, scalar_prefetch = 0 : i64, scratch_operands = 2 : i64, tpu.core_type = #tpu.core_type<tc>, window_params = [{transform_indices = @transform_0, window_bounds = array<i64: 1, 16, 32>}, {transform_indices = @transform_1, window_bounds = array<i64: 1, 16, 32>}, {transform_indices = @transform_2, window_bounds = array<i64: 1, 16, 32>}, {transform_indices = @transform_3, window_bounds = array<i64: 1, 16, 32>}]} {
    %c0 = arith.constant 0 : index
    %c0_0 = arith.constant 0 : index
    %c0_1 = arith.constant 0 : index
    %0 = vector.load %arg1[%c0, %c0_0, %c0_1] : memref<1x16x32xf32, #tpu.memory_space<vmem>>, vector<1x16x32xf32>
    %1 = vector.shape_cast %0 : vector<1x16x32xf32> to vector<16x32xf32>
    %c0_2 = arith.constant 0 : index
    %c0_3 = arith.constant 0 : index
    %c0_4 = arith.constant 0 : index
    %2 = vector.load %arg2[%c0_2, %c0_3, %c0_4] : memref<1x16x32xf32, #tpu.memory_space<vmem>>, vector<1x16x32xf32>
    %3 = vector.shape_cast %2 : vector<1x16x32xf32> to vector<16x32xf32>
    %c0_5 = arith.constant 0 : index
    %c0_6 = arith.constant 0 : index
    %c0_7 = arith.constant 0 : index
    %4 = vector.load %arg3[%c0_5, %c0_6, %c0_7] : memref<1x16x32xf32, #tpu.memory_space<vmem>>, vector<1x16x32xf32>
    %5 = vector.shape_cast %4 : vector<1x16x32xf32> to vector<16x32xf32>
    %c0_8 = arith.constant 0 : index
    %c0_9 = arith.constant 0 : index
    %6 = vector.load %arg5[%c0_8, %c0_9] : memref<32x32xf32, #tpu.memory_space<vmem>>, vector<16x32xf32>
    tpu.vector_store %arg5[%c0_8, %c0_9], %3 {strides = array<i32>} : memref<32x32xf32, #tpu.memory_space<vmem>>, vector<16x32xf32>,
    %c16 = arith.constant 16 : index
    %c0_10 = arith.constant 0 : index
    %7 = vector.load %arg5[%c16, %c0_10] : memref<32x32xf32, #tpu.memory_space<vmem>>, vector<16x32xf32>
    tpu.vector_store %arg5[%c16, %c0_10], %3 {strides = array<i32>} : memref<32x32xf32, #tpu.memory_space<vmem>>, vector<16x32xf32>,
    %c0_11 = arith.constant 0 : index
    %c0_12 = arith.constant 0 : index
    %8 = vector.load %arg6[%c0_11, %c0_12] : memref<32x32xf32, #tpu.memory_space<vmem>>, vector<16x32xf32>
    tpu.vector_store %arg6[%c0_11, %c0_12], %5 {strides = array<i32>} : memref<32x32xf32, #tpu.memory_space<vmem>>, vector<16x32xf32>,
    %c16_13 = arith.constant 16 : index
    %c0_14 = arith.constant 0 : index
    %9 = vector.load %arg6[%c16_13, %c0_14] : memref<32x32xf32, #tpu.memory_space<vmem>>, vector<16x32xf32>
    tpu.vector_store %arg6[%c16_13, %c0_14], %5 {strides = array<i32>} : memref<32x32xf32, #tpu.memory_space<vmem>>, vector<16x32xf32>,
    %10 = tpu.iota {dimensions = array<i32: 1>} : vector<1x16xi32>
    %11 = arith.sitofp %10 : vector<1x16xi32> to vector<1x16xf32>
    %cst = arith.constant 0.000000e+00 : f32
    %12 = vector.broadcast %cst : f32 to vector<1x16xf32>
    %c16_15 = arith.constant 16 : index
    %c0_16 = arith.constant 0 : index
    %13 = vector.load %arg5[%c16_15, %c0_16] : memref<32x32xf32, #tpu.memory_space<vmem>>, vector<16x32xf32>
    %14 = arith.mulf %1, %13 : vector<16x32xf32>
    %cst_17 = arith.constant dense<0.000000e+00> : vector<16xf32>
    %15 = vector.multi_reduction <add>, %14, %cst_17 [1] : vector<16x32xf32> to vector<16xf32>
    %16 = vector.shape_cast %15 : vector<16xf32> to vector<16x1xf32>
    %cst_18 = arith.constant dense<0.000000e+00> : vector<1xf32>
    %17 = vector.multi_reduction <add>, %16, %cst_18 [0] : vector<16x1xf32> to vector<1xf32>
    %18 = vector.shape_cast %17 : vector<1xf32> to vector<1x1xf32>
    %c0_i32 = arith.constant 0 : i32
    %19 = vector.broadcast %c0_i32 : i32 to vector<1x16xi32>
    %20 = arith.cmpi eq, %10, %19 : vector<1x16xi32>
    %21 = arith.extui %20 : vector<1x16xi1> to vector<1x16xi32>
    %22 = arith.sitofp %21 : vector<1x16xi32> to vector<1x16xf32>
    %23 = vector.broadcast %18 : vector<1x1xf32> to vector<1x16xf32>
    %24 = arith.mulf %23, %22 : vector<1x16xf32>
    %25 = arith.addf %12, %24 : vector<1x16xf32>
    %c15 = arith.constant 15 : index
    %c0_19 = arith.constant 0 : index
    %26 = vector.load %arg5[%c15, %c0_19] : memref<32x32xf32, #tpu.memory_space<vmem>>, vector<16x32xf32>
    %27 = arith.mulf %1, %26 : vector<16x32xf32>
    %cst_20 = arith.constant dense<0.000000e+00> : vector<16xf32>
    %28 = vector.multi_reduction <add>, %27, %cst_20 [1] : vector<16x32xf32> to vector<16xf32>
    %29 = vector.shape_cast %28 : vector<16xf32> to vector<16x1xf32>
    %cst_21 = arith.constant dense<0.000000e+00> : vector<1xf32>
    %30 = vector.multi_reduction <add>, %29, %cst_21 [0] : vector<16x1xf32> to vector<1xf32>
    %31 = vector.shape_cast %30 : vector<1xf32> to vector<1x1xf32>
    %c1_i32 = arith.constant 1 : i32
    %32 = vector.broadcast %c1_i32 : i32 to vector<1x16xi32>
    %33 = arith.cmpi eq, %10, %32 : vector<1x16xi32>
    %34 = arith.extui %33 : vector<1x16xi1> to vector<1x16xi32>
    %35 = arith.sitofp %34 : vector<1x16xi32> to vector<1x16xf32>
    %36 = vector.broadcast %31 : vector<1x1xf32> to vector<1x16xf32>
    %37 = arith.mulf %36, %35 : vector<1x16xf32>
    %38 = arith.addf %25, %37 : vector<1x16xf32>
    %c14 = arith.constant 14 : index
    %c0_22 = arith.constant 0 : index
    %39 = vector.load %arg5[%c14, %c0_22] : memref<32x32xf32, #tpu.memory_space<vmem>>, vector<16x32xf32>
    %40 = arith.mulf %1, %39 : vector<16x32xf32>
    %cst_23 = arith.constant dense<0.000000e+00> : vector<16xf32>
    %41 = vector.multi_reduction <add>, %40, %cst_23 [1] : vector<16x32xf32> to vector<16xf32>
    %42 = vector.shape_cast %41 : vector<16xf32> to vector<16x1xf32>
    %cst_24 = arith.constant dense<0.000000e+00> : vector<1xf32>
    %43 = vector.multi_reduction <add>, %42, %cst_24 [0] : vector<16x1xf32> to vector<1xf32>
    %44 = vector.shape_cast %43 : vector<1xf32> to vector<1x1xf32>
    %c2_i32 = arith.constant 2 : i32
    %45 = vector.broadcast %c2_i32 : i32 to vector<1x16xi32>
    %46 = arith.cmpi eq, %10, %45 : vector<1x16xi32>
    %47 = arith.extui %46 : vector<1x16xi1> to vector<1x16xi32>
    %48 = arith.sitofp %47 : vector<1x16xi32> to vector<1x16xf32>
    %49 = vector.broadcast %44 : vector<1x1xf32> to vector<1x16xf32>
    %50 = arith.mulf %49, %48 : vector<1x16xf32>
    %51 = arith.addf %38, %50 : vector<1x16xf32>
    %c13 = arith.constant 13 : index
    %c0_25 = arith.constant 0 : index
    %52 = vector.load %arg5[%c13, %c0_25] : memref<32x32xf32, #tpu.memory_space<vmem>>, vector<16x32xf32>
    %53 = arith.mulf %1, %52 : vector<16x32xf32>
    %cst_26 = arith.constant dense<0.000000e+00> : vector<16xf32>
    %54 = vector.multi_reduction <add>, %53, %cst_26 [1] : vector<16x32xf32> to vector<16xf32>
    %55 = vector.shape_cast %54 : vector<16xf32> to vector<16x1xf32>
    %cst_27 = arith.constant dense<0.000000e+00> : vector<1xf32>
    %56 = vector.multi_reduction <add>, %55, %cst_27 [0] : vector<16x1xf32> to vector<1xf32>
    %57 = vector.shape_cast %56 : vector<1xf32> to vector<1x1xf32>
    %c3_i32 = arith.constant 3 : i32
    %58 = vector.broadcast %c3_i32 : i32 to vector<1x16xi32>
    %59 = arith.cmpi eq, %10, %58 : vector<1x16xi32>
    %60 = arith.extui %59 : vector<1x16xi1> to vector<1x16xi32>
    %61 = arith.sitofp %60 : vector<1x16xi32> to vector<1x16xf32>
    %62 = vector.broadcast %57 : vector<1x1xf32> to vector<1x16xf32>
    %63 = arith.mulf %62, %61 : vector<1x16xf32>
    %64 = arith.addf %51, %63 : vector<1x16xf32>
    %c12 = arith.constant 12 : index
    %c0_28 = arith.constant 0 : index
    %65 = vector.load %arg5[%c12, %c0_28] : memref<32x32xf32, #tpu.memory_space<vmem>>, vector<16x32xf32>
    %66 = arith.mulf %1, %65 : vector<16x32xf32>
    %cst_29 = arith.constant dense<0.000000e+00> : vector<16xf32>
    %67 = vector.multi_reduction <add>, %66, %cst_29 [1] : vector<16x32xf32> to vector<16xf32>
    %68 = vector.shape_cast %67 : vector<16xf32> to vector<16x1xf32>
    %cst_30 = arith.constant dense<0.000000e+00> : vector<1xf32>
    %69 = vector.multi_reduction <add>, %68, %cst_30 [0] : vector<16x1xf32> to vector<1xf32>
    %70 = vector.shape_cast %69 : vector<1xf32> to vector<1x1xf32>
    %c4_i32 = arith.constant 4 : i32
    %71 = vector.broadcast %c4_i32 : i32 to vector<1x16xi32>
    %72 = arith.cmpi eq, %10, %71 : vector<1x16xi32>
    %73 = arith.extui %72 : vector<1x16xi1> to vector<1x16xi32>
    %74 = arith.sitofp %73 : vector<1x16xi32> to vector<1x16xf32>
    %75 = vector.broadcast %70 : vector<1x1xf32> to vector<1x16xf32>
    %76 = arith.mulf %75, %74 : vector<1x16xf32>
    %77 = arith.addf %64, %76 : vector<1x16xf32>
    %c11 = arith.constant 11 : index
    %c0_31 = arith.constant 0 : index
    %78 = vector.load %arg5[%c11, %c0_31] : memref<32x32xf32, #tpu.memory_space<vmem>>, vector<16x32xf32>
    %79 = arith.mulf %1, %78 : vector<16x32xf32>
    %cst_32 = arith.constant dense<0.000000e+00> : vector<16xf32>
    %80 = vector.multi_reduction <add>, %79, %cst_32 [1] : vector<16x32xf32> to vector<16xf32>
    %81 = vector.shape_cast %80 : vector<16xf32> to vector<16x1xf32>
    %cst_33 = arith.constant dense<0.000000e+00> : vector<1xf32>
    %82 = vector.multi_reduction <add>, %81, %cst_33 [0] : vector<16x1xf32> to vector<1xf32>
    %83 = vector.shape_cast %82 : vector<1xf32> to vector<1x1xf32>
    %c5_i32 = arith.constant 5 : i32
    %84 = vector.broadcast %c5_i32 : i32 to vector<1x16xi32>
    %85 = arith.cmpi eq, %10, %84 : vector<1x16xi32>
    %86 = arith.extui %85 : vector<1x16xi1> to vector<1x16xi32>
    %87 = arith.sitofp %86 : vector<1x16xi32> to vector<1x16xf32>
    %88 = vector.broadcast %83 : vector<1x1xf32> to vector<1x16xf32>
    %89 = arith.mulf %88, %87 : vector<1x16xf32>
    %90 = arith.addf %77, %89 : vector<1x16xf32>
    %c10 = arith.constant 10 : index
    %c0_34 = arith.constant 0 : index
    %91 = vector.load %arg5[%c10, %c0_34] : memref<32x32xf32, #tpu.memory_space<vmem>>, vector<16x32xf32>
    %92 = arith.mulf %1, %91 : vector<16x32xf32>
    %cst_35 = arith.constant dense<0.000000e+00> : vector<16xf32>
    %93 = vector.multi_reduction <add>, %92, %cst_35 [1] : vector<16x32xf32> to vector<16xf32>
    %94 = vector.shape_cast %93 : vector<16xf32> to vector<16x1xf32>
    %cst_36 = arith.constant dense<0.000000e+00> : vector<1xf32>
    %95 = vector.multi_reduction <add>, %94, %cst_36 [0] : vector<16x1xf32> to vector<1xf32>
    %96 = vector.shape_cast %95 : vector<1xf32> to vector<1x1xf32>
    %c6_i32 = arith.constant 6 : i32
    %97 = vector.broadcast %c6_i32 : i32 to vector<1x16xi32>
    %98 = arith.cmpi eq, %10, %97 : vector<1x16xi32>
    %99 = arith.extui %98 : vector<1x16xi1> to vector<1x16xi32>
    %100 = arith.sitofp %99 : vector<1x16xi32> to vector<1x16xf32>
    %101 = vector.broadcast %96 : vector<1x1xf32> to vector<1x16xf32>
    %102 = arith.mulf %101, %100 : vector<1x16xf32>
    %103 = arith.addf %90, %102 : vector<1x16xf32>
    %c9 = arith.constant 9 : index
    %c0_37 = arith.constant 0 : index
    %104 = vector.load %arg5[%c9, %c0_37] : memref<32x32xf32, #tpu.memory_space<vmem>>, vector<16x32xf32>
    %105 = arith.mulf %1, %104 : vector<16x32xf32>
    %cst_38 = arith.constant dense<0.000000e+00> : vector<16xf32>
    %106 = vector.multi_reduction <add>, %105, %cst_38 [1] : vector<16x32xf32> to vector<16xf32>
    %107 = vector.shape_cast %106 : vector<16xf32> to vector<16x1xf32>
    %cst_39 = arith.constant dense<0.000000e+00> : vector<1xf32>
    %108 = vector.multi_reduction <add>, %107, %cst_39 [0] : vector<16x1xf32> to vector<1xf32>
    %109 = vector.shape_cast %108 : vector<1xf32> to vector<1x1xf32>
    %c7_i32 = arith.constant 7 : i32
    %110 = vector.broadcast %c7_i32 : i32 to vector<1x16xi32>
    %111 = arith.cmpi eq, %10, %110 : vector<1x16xi32>
    %112 = arith.extui %111 : vector<1x16xi1> to vector<1x16xi32>
    %113 = arith.sitofp %112 : vector<1x16xi32> to vector<1x16xf32>
    %114 = vector.broadcast %109 : vector<1x1xf32> to vector<1x16xf32>
    %115 = arith.mulf %114, %113 : vector<1x16xf32>
    %116 = arith.addf %103, %115 : vector<1x16xf32>
    %c8 = arith.constant 8 : index
    %c0_40 = arith.constant 0 : index
    %117 = vector.load %arg5[%c8, %c0_40] : memref<32x32xf32, #tpu.memory_space<vmem>>, vector<16x32xf32>
    %118 = arith.mulf %1, %117 : vector<16x32xf32>
    %cst_41 = arith.constant dense<0.000000e+00> : vector<16xf32>
    %119 = vector.multi_reduction <add>, %118, %cst_41 [1] : vector<16x32xf32> to vector<16xf32>
    %120 = vector.shape_cast %119 : vector<16xf32> to vector<16x1xf32>
    %cst_42 = arith.constant dense<0.000000e+00> : vector<1xf32>
    %121 = vector.multi_reduction <add>, %120, %cst_42 [0] : vector<16x1xf32> to vector<1xf32>
    %122 = vector.shape_cast %121 : vector<1xf32> to vector<1x1xf32>
    %c8_i32 = arith.constant 8 : i32
    %123 = vector.broadcast %c8_i32 : i32 to vector<1x16xi32>
    %124 = arith.cmpi eq, %10, %123 : vector<1x16xi32>
    %125 = arith.extui %124 : vector<1x16xi1> to vector<1x16xi32>
    %126 = arith.sitofp %125 : vector<1x16xi32> to vector<1x16xf32>
    %127 = vector.broadcast %122 : vector<1x1xf32> to vector<1x16xf32>
    %128 = arith.mulf %127, %126 : vector<1x16xf32>
    %129 = arith.addf %116, %128 : vector<1x16xf32>
    %c7 = arith.constant 7 : index
    %c0_43 = arith.constant 0 : index
    %130 = vector.load %arg5[%c7, %c0_43] : memref<32x32xf32, #tpu.memory_space<vmem>>, vector<16x32xf32>
    %131 = arith.mulf %1, %130 : vector<16x32xf32>
    %cst_44 = arith.constant dense<0.000000e+00> : vector<16xf32>
    %132 = vector.multi_reduction <add>, %131, %cst_44 [1] : vector<16x32xf32> to vector<16xf32>
    %133 = vector.shape_cast %132 : vector<16xf32> to vector<16x1xf32>
    %cst_45 = arith.constant dense<0.000000e+00> : vector<1xf32>
    %134 = vector.multi_reduction <add>, %133, %cst_45 [0] : vector<16x1xf32> to vector<1xf32>
    %135 = vector.shape_cast %134 : vector<1xf32> to vector<1x1xf32>
    %c9_i32 = arith.constant 9 : i32
    %136 = vector.broadcast %c9_i32 : i32 to vector<1x16xi32>
    %137 = arith.cmpi eq, %10, %136 : vector<1x16xi32>
    %138 = arith.extui %137 : vector<1x16xi1> to vector<1x16xi32>
    %139 = arith.sitofp %138 : vector<1x16xi32> to vector<1x16xf32>
    %140 = vector.broadcast %135 : vector<1x1xf32> to vector<1x16xf32>
    %141 = arith.mulf %140, %139 : vector<1x16xf32>
    %142 = arith.addf %129, %141 : vector<1x16xf32>
    %c6 = arith.constant 6 : index
    %c0_46 = arith.constant 0 : index
    %143 = vector.load %arg5[%c6, %c0_46] : memref<32x32xf32, #tpu.memory_space<vmem>>, vector<16x32xf32>
    %144 = arith.mulf %1, %143 : vector<16x32xf32>
    %cst_47 = arith.constant dense<0.000000e+00> : vector<16xf32>
    %145 = vector.multi_reduction <add>, %144, %cst_47 [1] : vector<16x32xf32> to vector<16xf32>
    %146 = vector.shape_cast %145 : vector<16xf32> to vector<16x1xf32>
    %cst_48 = arith.constant dense<0.000000e+00> : vector<1xf32>
    %147 = vector.multi_reduction <add>, %146, %cst_48 [0] : vector<16x1xf32> to vector<1xf32>
    %148 = vector.shape_cast %147 : vector<1xf32> to vector<1x1xf32>
    %c10_i32 = arith.constant 10 : i32
    %149 = vector.broadcast %c10_i32 : i32 to vector<1x16xi32>
    %150 = arith.cmpi eq, %10, %149 : vector<1x16xi32>
    %151 = arith.extui %150 : vector<1x16xi1> to vector<1x16xi32>
    %152 = arith.sitofp %151 : vector<1x16xi32> to vector<1x16xf32>
    %153 = vector.broadcast %148 : vector<1x1xf32> to vector<1x16xf32>
    %154 = arith.mulf %153, %152 : vector<1x16xf32>
    %155 = arith.addf %142, %154 : vector<1x16xf32>
    %c5 = arith.constant 5 : index
    %c0_49 = arith.constant 0 : index
    %156 = vector.load %arg5[%c5, %c0_49] : memref<32x32xf32, #tpu.memory_space<vmem>>, vector<16x32xf32>
    %157 = arith.mulf %1, %156 : vector<16x32xf32>
    %cst_50 = arith.constant dense<0.000000e+00> : vector<16xf32>
    %158 = vector.multi_reduction <add>, %157, %cst_50 [1] : vector<16x32xf32> to vector<16xf32>
    %159 = vector.shape_cast %158 : vector<16xf32> to vector<16x1xf32>
    %cst_51 = arith.constant dense<0.000000e+00> : vector<1xf32>
    %160 = vector.multi_reduction <add>, %159, %cst_51 [0] : vector<16x1xf32> to vector<1xf32>
    %161 = vector.shape_cast %160 : vector<1xf32> to vector<1x1xf32>
    %c11_i32 = arith.constant 11 : i32
    %162 = vector.broadcast %c11_i32 : i32 to vector<1x16xi32>
    %163 = arith.cmpi eq, %10, %162 : vector<1x16xi32>
    %164 = arith.extui %163 : vector<1x16xi1> to vector<1x16xi32>
    %165 = arith.sitofp %164 : vector<1x16xi32> to vector<1x16xf32>
    %166 = vector.broadcast %161 : vector<1x1xf32> to vector<1x16xf32>
    %167 = arith.mulf %166, %165 : vector<1x16xf32>
    %168 = arith.addf %155, %167 : vector<1x16xf32>
    %c4 = arith.constant 4 : index
    %c0_52 = arith.constant 0 : index
    %169 = vector.load %arg5[%c4, %c0_52] : memref<32x32xf32, #tpu.memory_space<vmem>>, vector<16x32xf32>
    %170 = arith.mulf %1, %169 : vector<16x32xf32>
    %cst_53 = arith.constant dense<0.000000e+00> : vector<16xf32>
    %171 = vector.multi_reduction <add>, %170, %cst_53 [1] : vector<16x32xf32> to vector<16xf32>
    %172 = vector.shape_cast %171 : vector<16xf32> to vector<16x1xf32>
    %cst_54 = arith.constant dense<0.000000e+00> : vector<1xf32>
    %173 = vector.multi_reduction <add>, %172, %cst_54 [0] : vector<16x1xf32> to vector<1xf32>
    %174 = vector.shape_cast %173 : vector<1xf32> to vector<1x1xf32>
    %c12_i32 = arith.constant 12 : i32
    %175 = vector.broadcast %c12_i32 : i32 to vector<1x16xi32>
    %176 = arith.cmpi eq, %10, %175 : vector<1x16xi32>
    %177 = arith.extui %176 : vector<1x16xi1> to vector<1x16xi32>
    %178 = arith.sitofp %177 : vector<1x16xi32> to vector<1x16xf32>
    %179 = vector.broadcast %174 : vector<1x1xf32> to vector<1x16xf32>
    %180 = arith.mulf %179, %178 : vector<1x16xf32>
    %181 = arith.addf %168, %180 : vector<1x16xf32>
    %c3 = arith.constant 3 : index
    %c0_55 = arith.constant 0 : index
    %182 = vector.load %arg5[%c3, %c0_55] : memref<32x32xf32, #tpu.memory_space<vmem>>, vector<16x32xf32>
    %183 = arith.mulf %1, %182 : vector<16x32xf32>
    %cst_56 = arith.constant dense<0.000000e+00> : vector<16xf32>
    %184 = vector.multi_reduction <add>, %183, %cst_56 [1] : vector<16x32xf32> to vector<16xf32>
    %185 = vector.shape_cast %184 : vector<16xf32> to vector<16x1xf32>
    %cst_57 = arith.constant dense<0.000000e+00> : vector<1xf32>
    %186 = vector.multi_reduction <add>, %185, %cst_57 [0] : vector<16x1xf32> to vector<1xf32>
    %187 = vector.shape_cast %186 : vector<1xf32> to vector<1x1xf32>
    %c13_i32 = arith.constant 13 : i32
    %188 = vector.broadcast %c13_i32 : i32 to vector<1x16xi32>
    %189 = arith.cmpi eq, %10, %188 : vector<1x16xi32>
    %190 = arith.extui %189 : vector<1x16xi1> to vector<1x16xi32>
    %191 = arith.sitofp %190 : vector<1x16xi32> to vector<1x16xf32>
    %192 = vector.broadcast %187 : vector<1x1xf32> to vector<1x16xf32>
    %193 = arith.mulf %192, %191 : vector<1x16xf32>
    %194 = arith.addf %181, %193 : vector<1x16xf32>
    %c2 = arith.constant 2 : index
    %c0_58 = arith.constant 0 : index
    %195 = vector.load %arg5[%c2, %c0_58] : memref<32x32xf32, #tpu.memory_space<vmem>>, vector<16x32xf32>
    %196 = arith.mulf %1, %195 : vector<16x32xf32>
    %cst_59 = arith.constant dense<0.000000e+00> : vector<16xf32>
    %197 = vector.multi_reduction <add>, %196, %cst_59 [1] : vector<16x32xf32> to vector<16xf32>
    %198 = vector.shape_cast %197 : vector<16xf32> to vector<16x1xf32>
    %cst_60 = arith.constant dense<0.000000e+00> : vector<1xf32>
    %199 = vector.multi_reduction <add>, %198, %cst_60 [0] : vector<16x1xf32> to vector<1xf32>
    %200 = vector.shape_cast %199 : vector<1xf32> to vector<1x1xf32>
    %c14_i32 = arith.constant 14 : i32
    %201 = vector.broadcast %c14_i32 : i32 to vector<1x16xi32>
    %202 = arith.cmpi eq, %10, %201 : vector<1x16xi32>
    %203 = arith.extui %202 : vector<1x16xi1> to vector<1x16xi32>
    %204 = arith.sitofp %203 : vector<1x16xi32> to vector<1x16xf32>
    %205 = vector.broadcast %200 : vector<1x1xf32> to vector<1x16xf32>
    %206 = arith.mulf %205, %204 : vector<1x16xf32>
    %207 = arith.addf %194, %206 : vector<1x16xf32>
    %c1 = arith.constant 1 : index
    %c0_61 = arith.constant 0 : index
    %208 = vector.load %arg5[%c1, %c0_61] : memref<32x32xf32, #tpu.memory_space<vmem>>, vector<16x32xf32>
    %209 = arith.mulf %1, %208 : vector<16x32xf32>
    %cst_62 = arith.constant dense<0.000000e+00> : vector<16xf32>
    %210 = vector.multi_reduction <add>, %209, %cst_62 [1] : vector<16x32xf32> to vector<16xf32>
    %211 = vector.shape_cast %210 : vector<16xf32> to vector<16x1xf32>
    %cst_63 = arith.constant dense<0.000000e+00> : vector<1xf32>
    %212 = vector.multi_reduction <add>, %211, %cst_63 [0] : vector<16x1xf32> to vector<1xf32>
    %213 = vector.shape_cast %212 : vector<1xf32> to vector<1x1xf32>
    %c15_i32 = arith.constant 15 : i32
    %214 = vector.broadcast %c15_i32 : i32 to vector<1x16xi32>
    %215 = arith.cmpi eq, %10, %214 : vector<1x16xi32>
    %216 = arith.extui %215 : vector<1x16xi1> to vector<1x16xi32>
    %217 = arith.sitofp %216 : vector<1x16xi32> to vector<1x16xf32>
    %218 = vector.broadcast %213 : vector<1x1xf32> to vector<1x16xf32>
    %219 = arith.mulf %218, %217 : vector<1x16xf32>
    %220 = arith.addf %207, %219 : vector<1x16xf32>
    %cst_64 = arith.constant 3.125000e-02 : f32
    %221 = vector.broadcast %cst_64 : f32 to vector<1x16xf32>
    %222 = arith.mulf %220, %221 : vector<1x16xf32>
    %false = arith.constant false
    %223 = vector.broadcast %false : i1 to vector<1x16xi1>
    %cst_65 = arith.constant dense<0xFF800000> : vector<1xf32>
    %224 = vector.multi_reduction <maximumf>, %222, %cst_65 [1] : vector<1x16xf32> to vector<1xf32>
    %225 = vector.shape_cast %224 : vector<1xf32> to vector<1x1xf32>
    %226 = vector.broadcast %225 : vector<1x1xf32> to vector<1x16xf32>
    %227 = arith.cmpf oge, %222, %226 : vector<1x16xf32>
    %cst_66 = arith.constant 1.600000e+01 : f32
    %228 = vector.broadcast %cst_66 : f32 to vector<1x16xf32>
    %229 = arith.select %227, %11, %228 : vector<1x16xi1>, vector<1x16xf32>
    %cst_67 = arith.constant dense<0x7F800000> : vector<1xf32>
    %230 = vector.multi_reduction <minimumf>, %229, %cst_67 [1] : vector<1x16xf32> to vector<1xf32>
    %231 = vector.shape_cast %230 : vector<1xf32> to vector<1x1xf32>
    %232 = vector.broadcast %231 : vector<1x1xf32> to vector<1x16xf32>
    %233 = arith.cmpf oeq, %11, %232 : vector<1x16xf32>
    %234 = arith.ori %223, %233 : vector<1x16xi1>
    %cst_68 = arith.constant -1.000000e+30 : f32
    %235 = vector.broadcast %cst_68 : f32 to vector<1x16xf32>
    %236 = arith.select %233, %235, %222 : vector<1x16xi1>, vector<1x16xf32>
    %cst_69 = arith.constant dense<0xFF800000> : vector<1xf32>
    %237 = vector.multi_reduction <maximumf>, %236, %cst_69 [1] : vector<1x16xf32> to vector<1xf32>
    %238 = vector.shape_cast %237 : vector<1xf32> to vector<1x1xf32>
    %239 = vector.broadcast %238 : vector<1x1xf32> to vector<1x16xf32>
    %240 = arith.cmpf oge, %236, %239 : vector<1x16xf32>
    %cst_70 = arith.constant 1.600000e+01 : f32
    %241 = vector.broadcast %cst_70 : f32 to vector<1x16xf32>
    %242 = arith.select %240, %11, %241 : vector<1x16xi1>, vector<1x16xf32>
    %cst_71 = arith.constant dense<0x7F800000> : vector<1xf32>
    %243 = vector.multi_reduction <minimumf>, %242, %cst_71 [1] : vector<1x16xf32> to vector<1xf32>
    %244 = vector.shape_cast %243 : vector<1xf32> to vector<1x1xf32>
    %245 = vector.broadcast %244 : vector<1x1xf32> to vector<1x16xf32>
    %246 = arith.cmpf oeq, %11, %245 : vector<1x16xf32>
    %247 = arith.ori %234, %246 : vector<1x16xi1>
    %cst_72 = arith.constant -1.000000e+30 : f32
    %248 = vector.broadcast %cst_72 : f32 to vector<1x16xf32>
    %249 = arith.select %247, %222, %248 : vector<1x16xi1>, vector<1x16xf32>
    %cst_73 = arith.constant dense<0xFF800000> : vector<1xf32>
    %250 = vector.multi_reduction <maximumf>, %249, %cst_73 [1] : vector<1x16xf32> to vector<1xf32>
    %251 = vector.shape_cast %250 : vector<1xf32> to vector<1x1xf32>
    %252 = vector.broadcast %251 : vector<1x1xf32> to vector<1x16xf32>
    %253 = arith.subf %249, %252 : vector<1x16xf32>
    %254 = math.exp %253 : vector<1x16xf32>
    %255 = arith.extui %247 : vector<1x16xi1> to vector<1x16xi32>
    %256 = arith.sitofp %255 : vector<1x16xi32> to vector<1x16xf32>
    %257 = arith.mulf %254, %256 : vector<1x16xf32>
    %cst_74 = arith.constant dense<0.000000e+00> : vector<1xf32>
    %258 = vector.multi_reduction <add>, %257, %cst_74 [1] : vector<1x16xf32> to vector<1xf32>
    %259 = vector.shape_cast %258 : vector<1xf32> to vector<1x1xf32>
    %260 = tpu.reciprocal %259 : vector<1x1xf32> -> vector<1x1xf32>
    %261 = vector.broadcast %260 : vector<1x1xf32> to vector<1x16xf32>
    %262 = arith.mulf %257, %261 : vector<1x16xf32>
    %cst_75 = arith.constant 0.000000e+00 : f32
    %263 = vector.broadcast %cst_75 : f32 to vector<16x32xf32>
    %264 = vector.extract_strided_slice %262 {offsets = [0, 0], sizes = [1, 1], strides = [1, 1]} : vector<1x16xf32> to vector<1x1xf32>
    %c0_76 = arith.constant 0 : index
    %c0_77 = arith.constant 0 : index
    %265 = vector.load %arg6[%c0_76, %c0_77] : memref<32x32xf32, #tpu.memory_space<vmem>>, vector<16x32xf32>
    %266 = vector.broadcast %264 : vector<1x1xf32> to vector<16x32xf32>
    %267 = arith.mulf %266, %265 : vector<16x32xf32>
    %268 = arith.addf %263, %267 : vector<16x32xf32>
    %269 = vector.extract_strided_slice %262 {offsets = [0, 1], sizes = [1, 1], strides = [1, 1]} : vector<1x16xf32> to vector<1x1xf32>
    %c1_78 = arith.constant 1 : index
    %c0_79 = arith.constant 0 : index
    %270 = vector.load %arg6[%c1_78, %c0_79] : memref<32x32xf32, #tpu.memory_space<vmem>>, vector<16x32xf32>
    %271 = vector.broadcast %269 : vector<1x1xf32> to vector<16x32xf32>
    %272 = arith.mulf %271, %270 : vector<16x32xf32>
    %273 = arith.addf %268, %272 : vector<16x32xf32>
    %274 = vector.extract_strided_slice %262 {offsets = [0, 2], sizes = [1, 1], strides = [1, 1]} : vector<1x16xf32> to vector<1x1xf32>
    %c2_80 = arith.constant 2 : index
    %c0_81 = arith.constant 0 : index
    %275 = vector.load %arg6[%c2_80, %c0_81] : memref<32x32xf32, #tpu.memory_space<vmem>>, vector<16x32xf32>
    %276 = vector.broadcast %274 : vector<1x1xf32> to vector<16x32xf32>
    %277 = arith.mulf %276, %275 : vector<16x32xf32>
    %278 = arith.addf %273, %277 : vector<16x32xf32>
    %279 = vector.extract_strided_slice %262 {offsets = [0, 3], sizes = [1, 1], strides = [1, 1]} : vector<1x16xf32> to vector<1x1xf32>
    %c3_82 = arith.constant 3 : index
    %c0_83 = arith.constant 0 : index
    %280 = vector.load %arg6[%c3_82, %c0_83] : memref<32x32xf32, #tpu.memory_space<vmem>>, vector<16x32xf32>
    %281 = vector.broadcast %279 : vector<1x1xf32> to vector<16x32xf32>
    %282 = arith.mulf %281, %280 : vector<16x32xf32>
    %283 = arith.addf %278, %282 : vector<16x32xf32>
    %284 = vector.extract_strided_slice %262 {offsets = [0, 4], sizes = [1, 1], strides = [1, 1]} : vector<1x16xf32> to vector<1x1xf32>
    %c4_84 = arith.constant 4 : index
    %c0_85 = arith.constant 0 : index
    %285 = vector.load %arg6[%c4_84, %c0_85] : memref<32x32xf32, #tpu.memory_space<vmem>>, vector<16x32xf32>
    %286 = vector.broadcast %284 : vector<1x1xf32> to vector<16x32xf32>
    %287 = arith.mulf %286, %285 : vector<16x32xf32>
    %288 = arith.addf %283, %287 : vector<16x32xf32>
    %289 = vector.extract_strided_slice %262 {offsets = [0, 5], sizes = [1, 1], strides = [1, 1]} : vector<1x16xf32> to vector<1x1xf32>
    %c5_86 = arith.constant 5 : index
    %c0_87 = arith.constant 0 : index
    %290 = vector.load %arg6[%c5_86, %c0_87] : memref<32x32xf32, #tpu.memory_space<vmem>>, vector<16x32xf32>
    %291 = vector.broadcast %289 : vector<1x1xf32> to vector<16x32xf32>
    %292 = arith.mulf %291, %290 : vector<16x32xf32>
    %293 = arith.addf %288, %292 : vector<16x32xf32>
    %294 = vector.extract_strided_slice %262 {offsets = [0, 6], sizes = [1, 1], strides = [1, 1]} : vector<1x16xf32> to vector<1x1xf32>
    %c6_88 = arith.constant 6 : index
    %c0_89 = arith.constant 0 : index
    %295 = vector.load %arg6[%c6_88, %c0_89] : memref<32x32xf32, #tpu.memory_space<vmem>>, vector<16x32xf32>
    %296 = vector.broadcast %294 : vector<1x1xf32> to vector<16x32xf32>
    %297 = arith.mulf %296, %295 : vector<16x32xf32>
    %298 = arith.addf %293, %297 : vector<16x32xf32>
    %299 = vector.extract_strided_slice %262 {offsets = [0, 7], sizes = [1, 1], strides = [1, 1]} : vector<1x16xf32> to vector<1x1xf32>
    %c7_90 = arith.constant 7 : index
    %c0_91 = arith.constant 0 : index
    %300 = vector.load %arg6[%c7_90, %c0_91] : memref<32x32xf32, #tpu.memory_space<vmem>>, vector<16x32xf32>
    %301 = vector.broadcast %299 : vector<1x1xf32> to vector<16x32xf32>
    %302 = arith.mulf %301, %300 : vector<16x32xf32>
    %303 = arith.addf %298, %302 : vector<16x32xf32>
    %304 = vector.extract_strided_slice %262 {offsets = [0, 8], sizes = [1, 1], strides = [1, 1]} : vector<1x16xf32> to vector<1x1xf32>
    %c8_92 = arith.constant 8 : index
    %c0_93 = arith.constant 0 : index
    %305 = vector.load %arg6[%c8_92, %c0_93] : memref<32x32xf32, #tpu.memory_space<vmem>>, vector<16x32xf32>
    %306 = vector.broadcast %304 : vector<1x1xf32> to vector<16x32xf32>
    %307 = arith.mulf %306, %305 : vector<16x32xf32>
    %308 = arith.addf %303, %307 : vector<16x32xf32>
    %309 = vector.extract_strided_slice %262 {offsets = [0, 9], sizes = [1, 1], strides = [1, 1]} : vector<1x16xf32> to vector<1x1xf32>
    %c9_94 = arith.constant 9 : index
    %c0_95 = arith.constant 0 : index
    %310 = vector.load %arg6[%c9_94, %c0_95] : memref<32x32xf32, #tpu.memory_space<vmem>>, vector<16x32xf32>
    %311 = vector.broadcast %309 : vector<1x1xf32> to vector<16x32xf32>
    %312 = arith.mulf %311, %310 : vector<16x32xf32>
    %313 = arith.addf %308, %312 : vector<16x32xf32>
    %314 = vector.extract_strided_slice %262 {offsets = [0, 10], sizes = [1, 1], strides = [1, 1]} : vector<1x16xf32> to vector<1x1xf32>
    %c10_96 = arith.constant 10 : index
    %c0_97 = arith.constant 0 : index
    %315 = vector.load %arg6[%c10_96, %c0_97] : memref<32x32xf32, #tpu.memory_space<vmem>>, vector<16x32xf32>
    %316 = vector.broadcast %314 : vector<1x1xf32> to vector<16x32xf32>
    %317 = arith.mulf %316, %315 : vector<16x32xf32>
    %318 = arith.addf %313, %317 : vector<16x32xf32>
    %319 = vector.extract_strided_slice %262 {offsets = [0, 11], sizes = [1, 1], strides = [1, 1]} : vector<1x16xf32> to vector<1x1xf32>
    %c11_98 = arith.constant 11 : index
    %c0_99 = arith.constant 0 : index
    %320 = vector.load %arg6[%c11_98, %c0_99] : memref<32x32xf32, #tpu.memory_space<vmem>>, vector<16x32xf32>
    %321 = vector.broadcast %319 : vector<1x1xf32> to vector<16x32xf32>
    %322 = arith.mulf %321, %320 : vector<16x32xf32>
    %323 = arith.addf %318, %322 : vector<16x32xf32>
    %324 = vector.extract_strided_slice %262 {offsets = [0, 12], sizes = [1, 1], strides = [1, 1]} : vector<1x16xf32> to vector<1x1xf32>
    %c12_100 = arith.constant 12 : index
    %c0_101 = arith.constant 0 : index
    %325 = vector.load %arg6[%c12_100, %c0_101] : memref<32x32xf32, #tpu.memory_space<vmem>>, vector<16x32xf32>
    %326 = vector.broadcast %324 : vector<1x1xf32> to vector<16x32xf32>
    %327 = arith.mulf %326, %325 : vector<16x32xf32>
    %328 = arith.addf %323, %327 : vector<16x32xf32>
    %329 = vector.extract_strided_slice %262 {offsets = [0, 13], sizes = [1, 1], strides = [1, 1]} : vector<1x16xf32> to vector<1x1xf32>
    %c13_102 = arith.constant 13 : index
    %c0_103 = arith.constant 0 : index
    %330 = vector.load %arg6[%c13_102, %c0_103] : memref<32x32xf32, #tpu.memory_space<vmem>>, vector<16x32xf32>
    %331 = vector.broadcast %329 : vector<1x1xf32> to vector<16x32xf32>
    %332 = arith.mulf %331, %330 : vector<16x32xf32>
    %333 = arith.addf %328, %332 : vector<16x32xf32>
    %334 = vector.extract_strided_slice %262 {offsets = [0, 14], sizes = [1, 1], strides = [1, 1]} : vector<1x16xf32> to vector<1x1xf32>
    %c14_104 = arith.constant 14 : index
    %c0_105 = arith.constant 0 : index
    %335 = vector.load %arg6[%c14_104, %c0_105] : memref<32x32xf32, #tpu.memory_space<vmem>>, vector<16x32xf32>
    %336 = vector.broadcast %334 : vector<1x1xf32> to vector<16x32xf32>
    %337 = arith.mulf %336, %335 : vector<16x32xf32>
    %338 = arith.addf %333, %337 : vector<16x32xf32>
    %339 = vector.extract_strided_slice %262 {offsets = [0, 15], sizes = [1, 1], strides = [1, 1]} : vector<1x16xf32> to vector<1x1xf32>
    %c15_106 = arith.constant 15 : index
    %c0_107 = arith.constant 0 : index
    %340 = vector.load %arg6[%c15_106, %c0_107] : memref<32x32xf32, #tpu.memory_space<vmem>>, vector<16x32xf32>
    %341 = vector.broadcast %339 : vector<1x1xf32> to vector<16x32xf32>
    %342 = arith.mulf %341, %340 : vector<16x32xf32>
    %343 = arith.addf %338, %342 : vector<16x32xf32>
    %c0_108 = arith.constant 0 : index
    %c0_109 = arith.constant 0 : index
    %c0_110 = arith.constant 0 : index
    %344 = vector.load %arg4[%c0_108, %c0_109, %c0_110] : memref<1x16x32xf32, #tpu.memory_space<vmem>>, vector<1x16x32xf32>
    %345 = vector.shape_cast %344 : vector<1x16x32xf32> to vector<16x32xf32>
    %346 = vector.shape_cast %343 : vector<16x32xf32> to vector<1x16x32xf32>
    tpu.vector_store %arg4[%c0_108, %c0_109, %c0_110], %346 {strides = array<i32>} : memref<1x16x32xf32, #tpu.memory_space<vmem>>, vector<1x16x32xf32>,
    return
  }
  func.func @transform_0(%arg0: i32) -> (i32, i32, i32) {
    %c0_i32 = arith.constant 0 : i32
    %c0_i32_0 = arith.constant 0 : i32
    %c0_i32_1 = arith.constant 0 : i32
    return %arg0, %c0_i32, %c0_i32_0 : i32, i32, i32
  }
  func.func @transform_1(%arg0: i32) -> (i32, i32, i32) {
    %c0_i32 = arith.constant 0 : i32
    %c0_i32_0 = arith.constant 0 : i32
    %c0_i32_1 = arith.constant 0 : i32
    return %arg0, %c0_i32, %c0_i32_0 : i32, i32, i32
  }
  func.func @transform_2(%arg0: i32) -> (i32, i32, i32) {
    %c0_i32 = arith.constant 0 : i32
    %c0_i32_0 = arith.constant 0 : i32
    %c0_i32_1 = arith.constant 0 : i32
    return %arg0, %c0_i32, %c0_i32_0 : i32, i32, i32
  }
  func.func @transform_3(%arg0: i32) -> (i32, i32, i32) {
    %c0_i32 = arith.constant 0 : i32
    %c0_i32_0 = arith.constant 0 : i32
    %c0_i32_1 = arith.constant 0 : i32
    return %arg0, %c0_i32, %c0_i32_0 : i32, i32, i32
  }
}

</mosaic_0001>

<bundles_post_ra>
// kernel: tpu_custom_call.1
= control target key start
LH: loop header
LB: loop body
LE: loop exit
PB: predicated region body
PF: predicated region fallthrough
CT: control target
= control target key end

     0   :  { %s1724_s0 = inlined_call_operand.hbm [shape: f32[2,16,32], index: 0, kind: input, shape index: {}]   ;;  %s1725_s1 = inlined_call_operand.hbm [shape: f32[2,16,32], index: 1, kind: input, shape index: {}]   ;;  %s1726_s2 = inlined_call_operand.hbm [shape: f32[2,16,32], index: 2, kind: input, shape index: {}]   ;;  %s1727_s3 = inlined_call_operand.hbm [shape: f32[2,16,32], index: 3, kind: output, shape index: {}]  }
   0x1   :  { %1734 = sst [smem:[#allocation14_spill]] %s1724_s0 }
   0x2   :  { %8 = vsyncpa [#allocation5], 0 }
   0x3   :  { %10 = vsyncpa [#allocation5 + $0x1], 0 }
   0x4   :  { %11 = vsyncpa [#allocation8], 0 }
   0x5   :  { %13 = vsyncpa [#allocation8 + $0x1], 0 }
   0x6   :  { %14 = vsyncpa [#allocation6], 0 }
   0x7   :  { %16 = vsyncpa [#allocation6 + $0x1], 0  ;;  %s1305_s12 = smov 0   ;;  %s1307_s13 = smov 0  }
   0x8   :  { %s1309_s14 = smov 0   ;;  %s1311_s15 = smov 0  }
   0x9 LB: > { %s1326_s16 = sadd.s32 4294967295, %s1258_s15   ;;  %s958_s17 = sadd.s32 4294967294, %s1258_s15   ;;  %s1258_s15 = sphi %s1311_s15, %s1753_s15   ;;  %s1254_s14 = sphi %s1309_s14, %s1752_s14   ;;  %s1250_s13 = sphi %s1307_s13, %s1751_s13   ;;  %s1246_s12 = sphi %s1305_s12, %s1750_s12  }
   0xa   : > { %s1330_s18 = sadd.s32 1, %s1258_s15   ;;  %s29_s19 = sadd.s32 1, %s1254_s14 }
   0xb   : > { %s26_s20 = ssub.s32 %s1258_s15, %s1330_s18  ;;  %p36_p0 = scmp.ne.s32.totalorder %s1254_s14, %s1250_s13 }
   0xc   : > { %p27_p1 = scmp.eq.s32.totalorder %s26_s20, 0  ;;  %p37_p2 = scmp.eq.s32.totalorder %s1258_s15, 0 }
   0xd   : > { %p42_p3 = scmp.ne.s32.totalorder %s1250_s13, %s1246_s12  ;;  %p43_p4 = scmp.eq.s32.totalorder %s1326_s16, 0 }
   0xe   : > { %s1342_s21 = scalar_select %p27_p1, %s1254_s14, %s29_s19  }
   0xf   : > { %p38_p5 = por %p37_p2, %p36_p0  ;;  %p1344_p6 = por %p43_p4, %p42_p3 }
  0x10   : > { %p118_p7 = scmp.eq.s32.totalorder %s1326_s16, 1  ;;  %p124_p8 = scmp.eq.s32.totalorder %s958_s17, 1 }
  0x11   : > { %s1735_s22 = scalar_select %p1344_p6, 1, 0 }
  0x12   : > { %p1023_p10 = scmp.lt.s32.totalorder %s1258_s15, 2  ;;  %p1351_p11 = por %p118_p7, %p36_p0 }
  0x13   : > { %p1355_p12 = por %p124_p8, %p42_p3  ;;  %s144_s25 = sand.u32 1, %s1254_s14  }
  0x14   : > { %s1736_s23 = scalar_select %p1351_p11, 1, 0 }
  0x15   : > { %s1737_s24 = scalar_select %p1355_p12, 1, 0 }
  0x16   : > { %s1361_s26 = sshll.u32 %s1258_s15, 8  ;;  %s1365_s27 = sshll.u32 %s144_s25, 4 }
  0x17   : > { %p1367_p13 = pnand %p1023_p10, %p38_p5  ;;  %s165_s29 = sand.u32 1, %s1258_s15  }
  0x18   : > { %s1376_s5 = scalar_lea.hbm %s1725_s1, %s1361_s26  ;;  %s169_s6 = scalar_lea.vmem [#allocation7], %s1365_s27 }
  0x19   : > { %s176_s7 = sshll.u32 %s169_s6, 4  ;;  %s1382_s8 = scalar_lea.sflag [#allocation8], %s165_s29  ;;  %s1379_s7 = int_to_ptr.vmem [resolvable:$true] %s176_s7 }
  0x1a   : > { %s1098_s9 = scalar_lea.hbm %s1376_s5, 256  ;;  %p1388_p2 = pneg %p1367_p13 }
  0x1b   : > { %p1099_p1 = scmp.ne.s32.totalorder %s1376_s5, %s1098_s9  ;;  %s1103_s19 = scalar_lea.hbm %s1725_s1, 512 }
  0x1c   : > { %p1104_p5 = scmp.lt.u32.totalorder %s1376_s5, %s1725_s1  ;;  %p1105_p7 = scmp.lt.u32.totalorder %s1103_s19, %s1098_s9 }
  0x1d   : > { %p1101_p3 = pnand %p1388_p2, %p1099_p1  ;;  %p1107_p10 = scmp.lt.u32.totalorder %s1098_s9, %s1376_s5 }
  0x1e   : > { %p1106_p8 = por %p1105_p7, %p1104_p5 }
  0x1f   : > { %p1102_p4 = pneg %p1101_p3 }
  0x20   : > { %p1108_p9 = por %p1107_p10, %p1106_p8 }
  0x22   : > { %p1109_p0 = pnand %p1108_p9, %p1102_p4 }
  0x24   : > { %1112 = shalt.err (!%p1109_p0)
}
  0x25   : > { %s1113_s29 = scalar_lea.vmem %s1379_s7, 256  ;;  %s1260_s4 = smov [#allocation7]  }
  0x26   : > { %p1114_p1 = scmp.ne.s32.totalorder %s1379_s7, %s1113_s29  ;;  %s1118_s6 = sshll.u32 %s1260_s4, 4  ;;  %s1119_s6 = int_to_ptr.vmem [resolvable:$false] %s1118_s6 }
  0x27   : > { %s1120_s11 = scalar_lea.vmem %s1119_s6, 512  ;;  %p1121_p11 = scmp.lt.s32.totalorder %s1379_s7, %s1119_s6 }
  0x28   : > { %p1116_p3 = pnand %p1114_p1, %p1388_p2  ;;  %p1122_p6 = scmp.lt.s32.totalorder %s1120_s11, %s1113_s29 }
  0x2a   : > { %p1117_p12 = pneg %p1116_p3  ;;  %p1123_p5 = por %p1122_p6, %p1121_p11 }
  0x2c   : > { %p1124_p7 = pnand %p1123_p5, %p1117_p12 }
  0x2e   : > { %1127 = shalt.err (!%p1124_p7)
}
  0x2f   : > { %s1730_s9 = smov 128   ;;  %s1732_s17 = smov 8  }
  0x30   : > { %1015 = dma.hbm_to_vmem [thread:$0]  (!%p1367_p13), %s1376_s5, 256, %s1379_s7, %s1382_s8, %s1730_s9, %s1730_s9, %s1732_s17  }
  0x31   : > { %p205_p6 = scmp.lt.s32.totalorder %s1258_s15, 3  ;;  %s1740_s0 = sld [smem:[#allocation14_spill]] }
  0x32   : > { %p1741_p9 = scmp.ge.s32.totalorder %s1258_s15, 1  ;;  %s148_s4 = scalar_lea.vmem [#allocation4], %s1365_s27 }
  0x33   : > { %s155_s6 = sshll.u32 %s148_s4, 4  ;;  %s1433_s5 = scalar_lea.sflag [#allocation5], %s144_s25  ;;  %s1429_s6 = int_to_ptr.vmem [resolvable:$true] %s155_s6 }
  0x34   : > { %p1424_p11 = pnand %p1741_p9, %p205_p6 }
  0x36   : > { %s1742_s29 = scalar_select %p1424_p11, 1, 0 }
  0x37   : > { %s1420_s30 = scalar_lea.hbm %s1740_s0, %s1361_s26  ;;  %s1133_s20 = scalar_lea.hbm %s1740_s0, 512 }
  0x38   : > { %s1128_s7 = scalar_lea.hbm %s1420_s30, 256  ;;  %p1134_p8 = scmp.lt.u32.totalorder %s1420_s30, %s1740_s0 }
  0x39   : > { %p1129_p12 = scmp.ne.s32.totalorder %s1420_s30, %s1128_s7  ;;  %p1135_p10 = scmp.lt.u32.totalorder %s1133_s20, %s1128_s7 }
  0x3a   : > { %p1137_p3 = scmp.lt.u32.totalorder %s1128_s7, %s1420_s30 }
  0x3b   : > { %p1131_p0 = pnand %p1129_p12, %p1388_p2  ;;  %p1136_p1 = por %p1135_p10, %p1134_p8 }
  0x3d   : > { %p1132_p4 = pneg %p1131_p0  ;;  %p1138_p5 = por %p1137_p3, %p1136_p1 }
  0x3f   : > { %p1139_p7 = pnand %p1138_p5, %p1132_p4 }
  0x41   : > { %1142 = shalt.err (!%p1139_p7)
}
  0x42   : > { %s1143_s25 = scalar_lea.vmem %s1429_s6, 256  ;;  %s1263_s4 = smov [#allocation4]  }
  0x43   : > { %p1144_p6 = scmp.ne.s32.totalorder %s1429_s6, %s1143_s25  ;;  %s1148_s11 = sshll.u32 %s1263_s4, 4  ;;  %s1149_s11 = int_to_ptr.vmem [resolvable:$false] %s1148_s11 }
  0x44   : > { %s1150_s9 = scalar_lea.vmem %s1149_s11, 512  ;;  %p1151_p0 = scmp.lt.s32.totalorder %s1429_s6, %s1149_s11 }
  0x45   : > { %p1146_p9 = pnand %p1144_p6, %p1388_p2  ;;  %p1152_p11 = scmp.lt.s32.totalorder %s1150_s9, %s1143_s25 }
  0x47   : > { %p1147_p12 = pneg %p1146_p9  ;;  %p1153_p8 = por %p1152_p11, %p1151_p0 }
  0x49   : > { %p1154_p10 = pnand %p1153_p8, %p1147_p12 }
  0x4b   : > { %1157 = shalt.err (!%p1154_p10)
}
  0x4c   : > { %s1743_s17 = smov 8   ;;  %s1744_s7 = smov 128  }
  0x4d   : > { %1012 = dma.hbm_to_vmem [thread:$0]  (!%p1367_p13), %s1420_s30, 256, %s1429_s6, %s1433_s5, %s1744_s7, %s1744_s7, %s1743_s17  }
  0x4e   : > { %s1464_s4 = scalar_lea.hbm %s1726_s2, %s1361_s26  ;;  %s190_s25 = scalar_lea.vmem [#allocation9], %s1365_s27 }
  0x4f   : > { %s197_s11 = sshll.u32 %s190_s25, 4  ;;  %s1158_s9 = scalar_lea.hbm %s1464_s4, 256  ;;  %s1467_s11 = int_to_ptr.vmem [resolvable:$true] %s197_s11 }
  0x50   : > { %p1159_p11 = scmp.ne.s32.totalorder %s1464_s4, %s1158_s9  ;;  %s1163_s6 = scalar_lea.hbm %s1726_s2, 512 }
  0x51   : > { %p1164_p3 = scmp.lt.u32.totalorder %s1464_s4, %s1726_s2  ;;  %p1165_p5 = scmp.lt.u32.totalorder %s1163_s6, %s1158_s9 }
  0x52   : > { %p1161_p4 = pnand %p1159_p11, %p1388_p2  ;;  %p1167_p6 = scmp.lt.u32.totalorder %s1158_s9, %s1464_s4 }
  0x53   : > { %p1166_p7 = por %p1165_p5, %p1164_p3 }
  0x54   : > { %p1162_p1 = pneg %p1161_p4 }
  0x55   : > { %p1168_p9 = por %p1167_p6, %p1166_p7 }
  0x57   : > { %p1169_p12 = pnand %p1168_p9, %p1162_p1 }
  0x59   : > { %1172 = shalt.err (!%p1169_p12)
}
  0x5a   : > { %s1173_s27 = scalar_lea.vmem %s1467_s11, 256  ;;  %s1264_s0 = smov [#allocation9]  }
  0x5b   : > { %p1174_p0 = scmp.ne.s32.totalorder %s1467_s11, %s1173_s27  ;;  %s1178_s19 = sshll.u32 %s1264_s0, 4  ;;  %s1179_s19 = int_to_ptr.vmem [resolvable:$false] %s1178_s19 }
  0x5c   : > { %s1180_s20 = scalar_lea.vmem %s1179_s19, 512  ;;  %p1181_p11 = scmp.lt.s32.totalorder %s1467_s11, %s1179_s19 }
  0x5d   : > { %p1176_p8 = pnand %p1174_p0, %p1388_p2  ;;  %p1182_p4 = scmp.lt.s32.totalorder %s1180_s20, %s1173_s27 }
  0x5f   : > { %p1177_p10 = pneg %p1176_p8  ;;  %p1183_p3 = por %p1182_p4, %p1181_p11 }
  0x61   : > { %p1184_p5 = pnand %p1183_p3, %p1177_p10 }
  0x63   : > { %1187 = shalt.err (!%p1184_p5)
}
  0x64   : > { %1018 = dma.hbm_to_vmem [thread:$0]  (!%p1367_p13), %s1464_s4, 256, %s1467_s11, %s1382_s8, %s1744_s7, %s1744_s7, %s1743_s17  }
  0x65   : > { %p1745_p2 = scmp.ne.s32.totalorder %s1742_s29, 0 }
  0x66   : > { %s1497_s10 = sand.u32 (!%p1745_p2), 1, %s1250_s13   ;;  %p1746_p1 = scmp.ne.s32.totalorder (!%p1745_p2), %s1735_s22, 0 }
  0x67   : > { %209 = sbr.rel (%p1745_p2) target bundleno = 1450 (0x5aa), region = 32  ;;  %s1500_s25 = sshll.u32 (!%p1745_p2), %s1497_s10, 4 }
  0x68   : > { %s212_s28 = scalar_lea.sflag (!%p1745_p2), [#allocation5], %s1497_s10  ;;  %s215_s9 = scalar_lea.vmem (!%p1745_p2), [#allocation4], %s1500_s25 }
  0x6e   : > { %1233 = dma.done.wait (%p1746_p1), %s212_s28, 256  }
  0x6f   : > { %1235 = vsyncadd (%p1746_p1), %s212_s28, 4294967040  ;;  %s220_s8 = sand.u32 1, %s1326_s16   ;;  %s224_s17 = scalar_lea.vmem [#allocation7], %s1500_s25 }
  0x70   : > { %s221_s29 = scalar_lea.sflag [#allocation8], %s220_s8 }
  0x71   : > { %1237 = dma.done.wait (%p1746_p1), %s221_s29, 512  }
  0x72   : > { %1239 = vsyncadd (%p1746_p1), %s221_s29, 4294966784  ;;  %vm272_vm0 = vcmask 261120   ;;  %v268_v0 = vld [vmem:[%s224_s17] sm:$0xff]  ;;  %v269_v1 = vld [vmem:[%s224_s17 + $0x8] sm:$0xff]  ;;  %s233_s22 = scalar_lea.vmem [#allocation9], %s1500_s25  ;;  %s1000_s7 = sshll.u32 %s1326_s16, 8 }
  0x73   : > { %274 = vst.msk [vmem:[#allocation2 + $0x8] sm:$0xff] %vm272_vm0, %v269_v1  ;;  %275 = vst.msk [vmem:[#allocation2 + $0x10] sm:$0xff] %vm272_vm0, %v268_v0  ;;  %v1518_v2 = vld [vmem:[%s215_s9] sm:$0xff]  ;;  %v1520_v3 = vld [vmem:[%s215_s9 + $0x8] sm:$0xff]  ;;  %s265_s4 = scalar_lea.vmem [#allocation10], %s1500_s25  ;;  %s1676_s5 = scalar_lea.hbm %s1727_s3, %s1000_s7 }
  0x74   : > { %273 = vst.msk [vmem:[#allocation2] sm:$0xff] %vm272_vm0, %v268_v0  ;;  %276 = vst.msk [vmem:[#allocation2 + $0x18] sm:$0xff] %vm272_vm0, %v269_v1  ;;  %s842_s11 = sshll.u32 %s265_s4, 4  ;;  %s829_s16 = scalar_lea.sflag [#allocation6], %s1497_s10  ;;  %s1678_s11 = int_to_ptr.vmem [resolvable:$true] %s842_s11 }
  0x75   : > { %s1188_s26 = scalar_lea.vmem %s1678_s11, 256  ;;  %p1747_p7 = scmp.ne.s32.totalorder %s1736_s23, 0 }
  0x76   : > { %p1189_p13 = scmp.ne.s32.totalorder %s1678_s11, %s1188_s26  ;;  %s1282_s27 = smov [#allocation10]  }
  0x77   : > { %s1192_s0 = sshll.u32 %s1282_s27, 4  ;;  %s1193_s0 = int_to_ptr.vmem [resolvable:$false] %s1192_s0 }
  0x78   : > { %p1190_p6 = pnand %p1189_p13, %p1747_p7  ;;  %s1194_s19 = scalar_lea.vmem %s1193_s0, 512 }
  0x79   : > { %p1195_p12 = scmp.lt.s32.totalorder %s1678_s11, %s1193_s0  ;;  %p1196_p0 = scmp.lt.s32.totalorder %s1194_s19, %s1188_s26 }
  0x7a   : > { %v1522_v4 = vld [vmem:[#allocation2 + $0xf] sm:$0xff]  ;;  %p1191_p9 = pneg %p1190_p6 }
  0x7b   : > { %v284_v5 = vld [vmem:[#allocation2 + $0x10] sm:$0xff]  ;;  %v308_v7 = vmul.f32 %v1522_v4, %v1518_v2  ;;  %v285_v10 = vld [vmem:[#allocation2 + $0x18] sm:$0xff]  ;;  %v460_v50 = vld [vmem:[#allocation2 + $0x8] sm:$0xff]  ;;  %v483_v58 = vmul.f32 %v1522_v4, %v1520_v3  ;;  %p1197_p8 = por %p1196_p0, %p1195_p12 }
  0x7c   : > { %v307_v6 = vld [vmem:[#allocation2 + $0x17] sm:$0xff]  ;;  %v286_v8 = vmul.f32 %v284_v5, %v1518_v2  ;;  %v287_v11 = vmul.f32 %v285_v10, %v1520_v3  ;;  %v1529_v13 = vld [vmem:[#allocation2 + $0xe] sm:$0xff]  ;;  %v462_v53 = vmul.f32 %v284_v5, %v1520_v3  ;;  %v461_v54 = vmul.f32 %v460_v50, %v1518_v2  ;;  %v502_v60 = vld [vmem:[#allocation2 + $0x6] sm:$0xff] }
  0x7d   : > { %v309_v9 = vmul.f32 %v307_v6, %v1520_v3  ;;  %v329_v12 = vld [vmem:[#allocation2 + $0x16] sm:$0xff]  ;;  %v310_v14 = vsel %vm272_vm0, %v308_v7, 0.0  ;;  %v330_v19 = vmul.f32 %v1529_v13, %v1518_v2  ;;  %v1538_v21 = vld [vmem:[#allocation2 + $0xd] sm:$0xff]  ;;  %v487_v61 = vsel %vm272_vm0, %v483_v58, 0.0  ;;  %v523_v1 = vld [vmem:[#allocation2 + $0x5] sm:$0xff]  ;;  %p1198_p10 = pnand %p1197_p8, %p1191_p9 }
  0x7e   : > { %v288_v15 = vsel %vm272_vm0, %v286_v8, 0.0  ;;  %311 = vadd.xlane.f32.xlu1 %v310_v14  ;;  %v291_v17 = vsel %vm272_vm0, %v287_v11, 0.0  ;;  %v331_v18 = vmul.f32 %v329_v12, %v1520_v3  ;;  %v351_v20 = vld [vmem:[#allocation2 + $0x15] sm:$0xff]  ;;  %v352_v25 = vmul.f32 %v1538_v21, %v1518_v2  ;;  %v1545_v27 = vld [vmem:[#allocation2 + $0xc] sm:$0xff]  ;;  %v544_v8 = vld [vmem:[#allocation2 + $0x4] sm:$0xff] }
  0x7f   : > { %289 = vadd.xlane.f32.xlu0 %v288_v15  ;;  %v313_v16 = vsel %vm272_vm0, %v309_v9, 0.0  ;;  %v332_v23 = vsel %vm272_vm0, %v330_v19, 0.0  ;;  %v353_v24 = vmul.f32 %v351_v20, %v1520_v3  ;;  %v373_v26 = vld [vmem:[#allocation2 + $0x14] sm:$0xff]  ;;  %v374_v31 = vmul.f32 %v1545_v27, %v1518_v2  ;;  %v1552_v33 = vld [vmem:[#allocation2 + $0xb] sm:$0xff] }
  0x80   : > { %v335_v22 = vsel %vm272_vm0, %v331_v18, 0.0  ;;  %v354_v29 = vsel %vm272_vm0, %v352_v25, 0.0  ;;  %v375_v30 = vmul.f32 %v373_v26, %v1520_v3  ;;  %v395_v32 = vld [vmem:[#allocation2 + $0x13] sm:$0xff]  ;;  %v396_v37 = vmul.f32 %v1552_v33, %v1518_v2  ;;  %v416_v39 = vld [vmem:[#allocation2 + $0xa] sm:$0xff]  ;;  %v586_v18 = vld [vmem:[#allocation2 + $0x2] sm:$0xff] }
  0x81   : > { %v357_v28 = vsel %vm272_vm0, %v353_v24, 0.0  ;;  %v376_v35 = vsel %vm272_vm0, %v374_v31, 0.0  ;;  %v397_v36 = vmul.f32 %v395_v32, %v1520_v3  ;;  %v417_v38 = vld [vmem:[#allocation2 + $0x12] sm:$0xff]  ;;  %v418_v43 = vmul.f32 %v416_v39, %v1518_v2  ;;  %v438_v45 = vld [vmem:[#allocation2 + $0x9] sm:$0xff] }
  0x82   : > { %314 = vadd.xlane.f32.xlu1 %v313_v16  ;;  %v379_v34 = vsel %vm272_vm0, %v375_v30, 0.0  ;;  %v398_v41 = vsel %vm272_vm0, %v396_v37, 0.0  ;;  %v419_v42 = vmul.f32 %v417_v38, %v1520_v3  ;;  %v439_v44 = vld [vmem:[#allocation2 + $0x11] sm:$0xff]  ;;  %v440_v49 = vmul.f32 %v438_v45, %v1518_v2  ;;  %v481_v55 = vld [vmem:[#allocation2 + $0x7] sm:$0xff] }
  0x83   : > { %292 = vadd.xlane.f32.xlu0 %v291_v17  ;;  %v401_v40 = vsel %vm272_vm0, %v397_v36, 0.0  ;;  %v420_v47 = vsel %vm272_vm0, %v418_v43, 0.0  ;;  %v441_v48 = vmul.f32 %v439_v44, %v1520_v3  ;;  %v466_v56 = vsel %vm272_vm0, %v462_v53, 0.0 }
  0x84   : > { %v423_v46 = vsel %vm272_vm0, %v419_v42, 0.0  ;;  %v442_v52 = vsel %vm272_vm0, %v440_v49, 0.0  ;;  %v463_v57 = vsel %vm272_vm0, %v461_v54, 0.0  ;;  %v482_v59 = vmul.f32 %v481_v55, %v1518_v2 }
  0x85   : > { %v445_v51 = vsel %vm272_vm0, %v441_v48, 0.0  ;;  %v504_v63 = vmul.f32 %v1529_v13, %v1520_v3  ;;  %v503_v0 = vmul.f32 %v502_v60, %v1518_v2  ;;  %v525_v6 = vmul.f32 %v1538_v21, %v1520_v3  ;;  %v565_v13 = vld [vmem:[#allocation2 + $0x3] sm:$0xff] }
  0x86   : > { %336 = vadd.xlane.f32.xlu1 %v335_v22  ;;  %v484_v62 = vsel %vm272_vm0, %v482_v59, 0.0  ;;  %v524_v7 = vmul.f32 %v523_v1, %v1518_v2  ;;  %v546_v11 = vmul.f32 %v1545_v27, %v1520_v3  ;;  %v545_v12 = vmul.f32 %v544_v8, %v1518_v2 }
  0x87   : > { %333 = vadd.xlane.f32.xlu0 %v332_v23  ;;  %v508_v5 = vsel %vm272_vm0, %v504_v63, 0.0  ;;  %v505_v4 = vsel %vm272_vm0, %v503_v0, 0.0  ;;  %v529_v9 = vsel %vm272_vm0, %v525_v6, 0.0  ;;  %v567_v16 = vmul.f32 %v1552_v33, %v1520_v3  ;;  %v607_v23 = vld [vmem:[#allocation2 + $0x1] sm:$0xff] }
  0x88   : > { %v526_v10 = vsel %vm272_vm0, %v524_v7, 0.0  ;;  %v550_v14 = vsel %vm272_vm0, %v546_v11, 0.0  ;;  %v547_v15 = vsel %vm272_vm0, %v545_v12, 0.0  ;;  %v566_v17 = vmul.f32 %v565_v13, %v1518_v2 }
  0x89   : > { %v571_v19 = vsel %vm272_vm0, %v567_v16, 0.0  ;;  %v588_v21 = vmul.f32 %v416_v39, %v1520_v3  ;;  %v587_v22 = vmul.f32 %v586_v18, %v1518_v2  ;;  %v609_v26 = vmul.f32 %v438_v45, %v1520_v3 }
  0x8a   : > { %358 = vadd.xlane.f32.xlu1 %v357_v28  ;;  %v568_v20 = vsel %vm272_vm0, %v566_v17, 0.0  ;;  %v608_v27 = vmul.f32 %v607_v23, %v1518_v2  ;;  %v281_v55 = vlaneseq }
  0x8b   : > { %355 = vadd.xlane.f32.xlu0 %v354_v29  ;;  %v592_v24 = vsel %vm272_vm0, %v588_v21, 0.0  ;;  %v589_v25 = vsel %vm272_vm0, %v587_v22, 0.0  ;;  %v613_v28 = vsel %vm272_vm0, %v609_v26, 0.0  ;;  %v1265_v26 = vmov 0.0  }
  0x8c   : > { %v610_v29 = vsel %vm272_vm0, %v608_v27, 0.0 }
  0x8e   : > { %380 = vadd.xlane.f32.xlu1 %v379_v34 }
  0x8f   : > { %377 = vadd.xlane.f32.xlu0 %v376_v35 }
  0x92   : > { %402 = vadd.xlane.f32.xlu1 %v401_v40 }
  0x93   : > { %399 = vadd.xlane.f32.xlu0 %v398_v41 }
  0x96   : > { %424 = vadd.xlane.f32.xlu1 %v423_v46 }
  0x97   : > { %421 = vadd.xlane.f32.xlu0 %v420_v47 }
  0x9a   : > { %446 = vadd.xlane.f32.xlu1 %v445_v51 }
  0x9b   : > { %443 = vadd.xlane.f32.xlu0 %v442_v52 }
  0x9e   : > { %467 = vadd.xlane.f32.xlu1 %v466_v56 }
  0x9f   : > { %464 = vadd.xlane.f32.xlu0 %v463_v57 }
  0xa2   : > { %488 = vadd.xlane.f32.xlu1 %v487_v61 }
  0xa3   : > { %485 = vadd.xlane.f32.xlu0 %v484_v62 }
  0xa6   : > { %509 = vadd.xlane.f32.xlu1 %v508_v5  ;;  %v1606_v5 = vand.u32 127, %v281_v55 }
  0xa7   : > { %506 = vadd.xlane.f32.xlu0 %v505_v4 }
  0xa8   : > { %vm323_vm1 = vcmp.eq.s32.totalorder %v1606_v5, 1  ;;  %vm301_vm2 = vcmp.eq.s32.totalorder %v1606_v5, 0  ;;  %vm345_vm3 = vcmp.eq.s32.totalorder %v1606_v5, 2  ;;  %vm367_vm4 = vcmp.eq.s32.totalorder %v1606_v5, 3 }
  0xa9   : > { %v976_v27 = vsel %vm323_vm1, 1.0, %v1265_v26  ;;  %vm389_vm5 = vcmp.eq.s32.totalorder %v1606_v5, 4  ;;  %vm411_vm6 = vcmp.eq.s32.totalorder %v1606_v5, 5  ;;  %vm433_vm7 = vcmp.eq.s32.totalorder %v1606_v5, 6 }
  0xaa   : > { %530 = vadd.xlane.f32.xlu1 %v529_v9  ;;  %vm455_vm8 = vcmp.eq.s32.totalorder %v1606_v5, 7  ;;  %vm476_vm9 = vcmp.eq.s32.totalorder %v1606_v5, 8  ;;  %vm497_vm10 = vcmp.eq.s32.totalorder %v1606_v5, 9  ;;  %vm518_vm11 = vcmp.eq.s32.totalorder %v1606_v5, 10 }
  0xab   : > { %527 = vadd.xlane.f32.xlu0 %v526_v10  ;;  %vm539_vm12 = vcmp.eq.s32.totalorder %v1606_v5, 11  ;;  %vm560_vm13 = vcmp.eq.s32.totalorder %v1606_v5, 12  ;;  %vm581_vm14 = vcmp.eq.s32.totalorder %v1606_v5, 13  ;;  %vm602_vm15 = vcmp.eq.s32.totalorder %v1606_v5, 14 }
  0xac   : > { %vm623_vm1 = vcmp.eq.s32.totalorder %v1606_v5, 15 }
  0xae   : > { %551 = vadd.xlane.f32.xlu1 %v550_v14 }
  0xaf   : > { %548 = vadd.xlane.f32.xlu0 %v547_v15 }
  0xb2   : > { %572 = vadd.xlane.f32.xlu1 %v571_v19 }
  0xb3   : > { %569 = vadd.xlane.f32.xlu0 %v568_v20 }
  0xb6   : > { %593 = vadd.xlane.f32.xlu1 %v592_v24 }
  0xb7   : > { %590 = vadd.xlane.f32.xlu0 %v589_v25 }
  0xba   : > { %614 = vadd.xlane.f32.xlu1 %v613_v28 }
  0xbb   : > { %611 = vadd.xlane.f32.xlu0 %v610_v29 }
 0x10b   : > { %v312_v30 = vpop.xlane.xlu1 %311 }
 0x10c   : > { %v290_v31 = vpop.xlane.xlu0 %289 }
 0x10f   : > { %v315_v32 = vpop.xlane.xlu1 %314 }
 0x110   : > { %v293_v33 = vpop.xlane.xlu0 %292  ;;  %v316_v38 = vadd.f32 %v315_v32, %v312_v30 }
 0x111   : > { %v294_v3 = vadd.f32 %v293_v33, %v290_v31 }
 0x112   : > { %v317_v41 = vrot.slane %v316_v38, 4 }
 0x113   : > { %v337_v34 = vpop.xlane.xlu1 %336  ;;  %v295_v42 = vrot.slane %v294_v3, 4 }
 0x114   : > { %v334_v35 = vpop.xlane.xlu0 %333  ;;  %v318_v48 = vadd.f32 %v317_v41, %v316_v38 }
 0x115   : > { %v338_v40 = vadd.f32 %v337_v34, %v334_v35  ;;  %v296_v49 = vadd.f32 %v295_v42, %v294_v3  ;;  %v975_v34 = vsel %vm301_vm2, 1.0, %v1265_v26  ;;  %v978_v42 = vsel %vm367_vm4, 1.0, %v1265_v26 }
 0x116   : > { %v319_v58 = vrot.slane %v318_v48, 2  ;;  %vm629_vm2 = vcmask 130048  }
 0x117   : > { %v359_v36 = vpop.xlane.xlu1 %358  ;;  %v339_v46 = vrot.slane %v338_v40, 4  ;;  %v297_v59 = vrot.slane %v296_v49, 2 }
 0x118   : > { %v356_v37 = vpop.xlane.xlu0 %355  ;;  %v320_v7 = vadd.f32 %v319_v58, %v318_v48 }
 0x119   : > { %v360_v43 = vadd.f32 %v359_v36, %v356_v37  ;;  %v340_v54 = vadd.f32 %v339_v46, %v338_v40  ;;  %v298_v8 = vadd.f32 %v297_v59, %v296_v49  ;;  %v977_v36 = vsel %vm345_vm3, 1.0, %v1265_v26 }
 0x11a   : > { %v321_v18 = vrot.slane %v320_v7, 1 }
 0x11b   : > { %v381_v39 = vpop.xlane.xlu1 %380  ;;  %v361_v50 = vrot.slane %v360_v43, 4  ;;  %v341_v0 = vrot.slane %v340_v54, 2  ;;  %v299_v19 = vrot.slane %v298_v8, 1 }
 0x11c   : > { %v378_v2 = vpop.xlane.xlu0 %377  ;;  %v322_v33 = vadd.f32 %v321_v18, %v320_v7 }
 0x11d   : > { %v382_v47 = vadd.f32 %v381_v39, %v378_v2  ;;  %v362_v60 = vadd.f32 %v361_v50, %v360_v43  ;;  %v342_v14 = vadd.f32 %v341_v0, %v340_v54  ;;  %v300_v35 = vadd.f32 %v299_v19, %v298_v8 }
 0x11e   : > { %v326_v48 = vmul.f32 %v976_v27, %v322_v33  ;;  %v980_v0 = vsel %vm411_vm6, 1.0, %v1265_v26 }
 0x11f   : > { %v403_v44 = vpop.xlane.xlu1 %402  ;;  %v383_v56 = vrot.slane %v382_v47, 4  ;;  %v363_v9 = vrot.slane %v362_v60, 2  ;;  %v343_v28 = vrot.slane %v342_v14, 1  ;;  %v304_v50 = vmul.f32 %v975_v34, %v300_v35 }
 0x120   : > { %v400_v45 = vpop.xlane.xlu0 %399 }
 0x121   : > { %v404_v51 = vadd.f32 %v403_v44, %v400_v45  ;;  %v384_v4 = vadd.f32 %v383_v56, %v382_v47  ;;  %v364_v21 = vadd.f32 %v363_v9, %v362_v60  ;;  %v344_v41 = vadd.f32 %v343_v28, %v342_v14 }
 0x122   : > { %v979_v56 = vsel %vm389_vm5, 1.0, %v1265_v26  ;;  %v327_v7 = vadd.f32 %v326_v48, %v304_v50 }
 0x123   : > { %v425_v52 = vpop.xlane.xlu1 %424  ;;  %v405_v61 = vrot.slane %v404_v51, 4  ;;  %v385_v16 = vrot.slane %v384_v4, 2  ;;  %v365_v37 = vrot.slane %v364_v21, 1  ;;  %v348_v60 = vmul.f32 %v977_v36, %v344_v41 }
 0x124   : > { %v422_v53 = vpop.xlane.xlu0 %421  ;;  %v983_v36 = vsel %vm476_vm9, 1.0, %v1265_v26 }
 0x125   : > { %v426_v57 = vadd.f32 %v425_v52, %v422_v53  ;;  %v406_v10 = vadd.f32 %v405_v61, %v404_v51  ;;  %v386_v29 = vadd.f32 %v385_v16, %v384_v4  ;;  %v366_v51 = vadd.f32 %v365_v37, %v364_v21 }
 0x126   : > { %v349_v16 = vadd.f32 %v348_v60, %v327_v7 }
 0x127   : > { %v447_v62 = vpop.xlane.xlu1 %446  ;;  %v427_v6 = vrot.slane %v426_v57, 4  ;;  %v407_v22 = vrot.slane %v406_v10, 2  ;;  %v387_v44 = vrot.slane %v386_v29, 1  ;;  %v370_v8 = vmul.f32 %v978_v42, %v366_v51 }
 0x128   : > { %v444_v63 = vpop.xlane.xlu0 %443 }
 0x129   : > { %v448_v1 = vadd.f32 %v447_v62, %v444_v63  ;;  %v428_v17 = vadd.f32 %v427_v6, %v426_v57  ;;  %v408_v38 = vadd.f32 %v407_v22, %v406_v10  ;;  %v388_v61 = vadd.f32 %v387_v44, %v386_v29 }
 0x12b   : > { %v449_v11 = vrot.slane %v448_v1, 4  ;;  %v468_v12 = vpop.xlane.xlu1 %467  ;;  %v429_v30 = vrot.slane %v428_v17, 2  ;;  %v409_v52 = vrot.slane %v408_v38, 1 }
 0x12c   : > { %v465_v13 = vpop.xlane.xlu0 %464 }
 0x12d   : > { %v469_v15 = vadd.f32 %v468_v12, %v465_v13  ;;  %v450_v23 = vadd.f32 %v449_v11, %v448_v1  ;;  %v430_v45 = vadd.f32 %v429_v30, %v428_v17  ;;  %v981_v1 = vsel %vm433_vm7, 1.0, %v1265_v26 }
 0x12e   : > { %v410_v9 = vadd.f32 %v409_v52, %v408_v38  ;;  %v392_v17 = vmul.f32 %v979_v56, %v388_v61 }
 0x12f   : > { %v470_v20 = vrot.slane %v469_v15, 4  ;;  %v489_v24 = vpop.xlane.xlu1 %488  ;;  %v451_v3 = vrot.slane %v450_v23, 2  ;;  %v431_v62 = vrot.slane %v430_v45, 1 }
 0x130   : > { %v486_v25 = vpop.xlane.xlu0 %485 }
 0x131   : > { %v471_v31 = vadd.f32 %v470_v20, %v469_v15  ;;  %v490_v32 = vadd.f32 %v489_v24, %v486_v25  ;;  %v452_v53 = vadd.f32 %v451_v3, %v450_v23  ;;  %v432_v18 = vadd.f32 %v431_v62, %v430_v45 }
 0x132   : > { %v371_v23 = vadd.f32 %v370_v8, %v349_v16  ;;  %v414_v24 = vmul.f32 %v980_v0, %v410_v9  ;;  %v982_v25 = vsel %vm455_vm8, 1.0, %v1265_v26  ;;  %v986_v0 = vsel %vm539_vm12, 1.0, %v1265_v26 }
 0x133   : > { %v491_v39 = vrot.slane %v490_v32, 4  ;;  %v510_v2 = vpop.xlane.xlu1 %509  ;;  %v472_v46 = vrot.slane %v471_v31, 2  ;;  %v453_v10 = vrot.slane %v452_v53, 1  ;;  %v436_v35 = vmul.f32 %v981_v1, %v432_v18 }
 0x134   : > { %v507_v40 = vpop.xlane.xlu0 %506  ;;  %v393_v34 = vadd.f32 %v392_v17, %v371_v23  ;;  %v987_v9 = vsel %vm560_vm13, 1.0, %v1265_v26 }
 0x135   : > { %v511_v43 = vadd.f32 %v510_v2, %v507_v40  ;;  %v492_v47 = vadd.f32 %v491_v39, %v490_v32  ;;  %v473_v63 = vadd.f32 %v472_v46, %v471_v31  ;;  %v454_v27 = vadd.f32 %v453_v10, %v452_v53 }
 0x136   : > { %v415_v2 = vadd.f32 %v414_v24, %v393_v34 }
 0x137   : > { %v512_v49 = vrot.slane %v511_v43, 4  ;;  %v531_v54 = vpop.xlane.xlu1 %530  ;;  %v493_v57 = vrot.slane %v492_v47, 2  ;;  %v474_v19 = vrot.slane %v473_v63, 1  ;;  %v458_v40 = vmul.f32 %v982_v25, %v454_v27 }
 0x138   : > { %v528_v55 = vpop.xlane.xlu0 %527 }
 0x139   : > { %v513_v58 = vadd.f32 %v512_v49, %v511_v43  ;;  %v532_v59 = vadd.f32 %v531_v54, %v528_v55  ;;  %v494_v13 = vadd.f32 %v493_v57, %v492_v47  ;;  %v475_v37 = vadd.f32 %v474_v19, %v473_v63 }
 0x13a   : > { %v437_v47 = vadd.f32 %v436_v35, %v415_v2  ;;  %v984_v49 = vsel %vm497_vm10, 1.0, %v1265_v26  ;;  %v985_v55 = vsel %vm518_vm11, 1.0, %v1265_v26 }
 0x13b   : > { %v514_v4 = vrot.slane %v513_v58, 2  ;;  %v533_v6 = vrot.slane %v532_v59, 4  ;;  %v552_v11 = vpop.xlane.xlu1 %551  ;;  %v495_v30 = vrot.slane %v494_v13, 1  ;;  %v479_v48 = vmul.f32 %v983_v36, %v475_v37 }
 0x13c   : > { %v549_v12 = vpop.xlane.xlu0 %548  ;;  %v459_v54 = vadd.f32 %v458_v40, %v437_v47 }
 0x13d   : > { %v534_v14 = vadd.f32 %v533_v6, %v532_v59  ;;  %v553_v15 = vadd.f32 %v552_v11, %v549_v12  ;;  %v515_v20 = vadd.f32 %v514_v4, %v513_v58  ;;  %v496_v43 = vadd.f32 %v495_v30, %v494_v13 }
 0x13e   : > { %v480_v63 = vadd.f32 %v479_v48, %v459_v54  ;;  %v990_v30 = vsel %vm623_vm1, 1.0, %v1265_v26 }
 0x13f   : > { %v535_v21 = vrot.slane %v534_v14, 2  ;;  %v554_v22 = vrot.slane %v553_v15, 4  ;;  %v573_v28 = vpop.xlane.xlu1 %572  ;;  %v516_v38 = vrot.slane %v515_v20, 1  ;;  %v500_v59 = vmul.f32 %v984_v49, %v496_v43 }
 0x140   : > { %v570_v29 = vpop.xlane.xlu0 %569 }
 0x141   : > { %v536_v31 = vadd.f32 %v535_v21, %v534_v14  ;;  %v555_v32 = vadd.f32 %v554_v22, %v553_v15  ;;  %v574_v33 = vadd.f32 %v573_v28, %v570_v29  ;;  %v517_v51 = vadd.f32 %v516_v38, %v515_v20 }
 0x142   : > { %v501_v11 = vadd.f32 %v500_v59, %v480_v63  ;;  %v988_v15 = vsel %vm581_vm14, 1.0, %v1265_v26  ;;  %v989_v20 = vsel %vm602_vm15, 1.0, %v1265_v26  ;;  %v283_v38 = vcvt.s32.f32 %v1606_v5 }
 0x143   : > { %v556_v3 = vrot.slane %v555_v32, 2  ;;  %v575_v39 = vrot.slane %v574_v33, 4  ;;  %v594_v41 = vpop.xlane.xlu1 %593  ;;  %v537_v44 = vrot.slane %v536_v31, 1  ;;  %v521_v4 = vmul.f32 %v985_v55, %v517_v51 }
 0x144   : > { %v591_v42 = vpop.xlane.xlu0 %590  ;;  %v1266_v55 = vmov 1   ;;  %v1270_v63 = vmov 3  }
 0x145   : > { %v557_v45 = vadd.f32 %v556_v3, %v555_v32  ;;  %v576_v46 = vadd.f32 %v575_v39, %v574_v33  ;;  %v595_v50 = vadd.f32 %v594_v41, %v591_v42  ;;  %v538_v60 = vadd.f32 %v537_v44, %v536_v31  ;;  %1079 = vset.pattern.permute.xlu1 %v1266_v55 }
 0x146   : > { %v522_v17 = vadd.f32 %v521_v4, %v501_v11  ;;  %v1273_v4 = vmov 15   ;;  %v1279_v11 = vmov 11  }
 0x147   : > { %v558_v52 = vrot.slane %v557_v45, 1  ;;  %v577_v53 = vrot.slane %v576_v46, 2  ;;  %v596_v56 = vrot.slane %v595_v50, 4  ;;  %v615_v57 = vpop.xlane.xlu1 %614  ;;  %v542_v12 = vmul.f32 %v986_v0, %v538_v60 }
 0x148   : > { %v612_v58 = vpop.xlane.xlu0 %611  ;;  %v1271_v0 = vmov 12  }
 0x149   : > { %v578_v61 = vadd.f32 %v577_v53, %v576_v46  ;;  %v616_v62 = vadd.f32 %v615_v57, %v612_v58  ;;  %v597_v1 = vadd.f32 %v596_v56, %v595_v50  ;;  %v559_v6 = vadd.f32 %v558_v52, %v557_v45  ;;  %v270_v57 = vld [vmem:[%s233_s22] sm:$0xff]  ;;  %v271_v58 = vld [vmem:[%s233_s22 + $0x8] sm:$0xff] }
 0x14a   : > { %v543_v22 = vadd.f32 %v542_v12, %v522_v17  ;;  %v1267_v56 = vmov 0   ;;  %277 = vst.msk [vmem:[#allocation3] sm:$0xff] %vm272_vm0, %v270_v57  ;;  %278 = vst.msk [vmem:[#allocation3 + $0x8] sm:$0xff] %vm272_vm0, %v271_v58  ;;  %v1280_v12 = vmov 13  }
 0x14b   : > { %v579_v7 = vrot.slane %v578_v61, 1  ;;  %v617_v8 = vrot.slane %v616_v62, 4  ;;  %v598_v10 = vrot.slane %v597_v1, 2  ;;  %v563_v18 = vmul.f32 %v987_v9, %v559_v6  ;;  %1078 = vset.pattern.permute.xlu0 %v1267_v56  ;;  %279 = vst.msk [vmem:[#allocation3 + $0x10] sm:$0xff] %vm272_vm0, %v270_v57  ;;  %280 = vst.msk [vmem:[#allocation3 + $0x18] sm:$0xff] %vm272_vm0, %v271_v58 }
 0x14c   : > { %v1274_v6 = vmov 5   ;;  %v1277_v9 = vmov 8  }
 0x14d   : > { %v580_v13 = vadd.f32 %v579_v7, %v578_v61  ;;  %v618_v14 = vadd.f32 %v617_v8, %v616_v62  ;;  %v599_v16 = vadd.f32 %v598_v10, %v597_v1  ;;  %v564_v27 = vadd.f32 %v563_v18, %v543_v22 }
 0x14e   : > { %v1268_v61 = vmov 2   ;;  %v1269_v62 = vmov 9   ;;  %v1272_v1 = vmov 4   ;;  %v1275_v7 = vmov 6  }
 0x14f   : > { %v619_v19 = vrot.slane %v618_v14, 2  ;;  %v600_v21 = vrot.slane %v599_v16, 1  ;;  %v584_v23 = vmul.f32 %v988_v15, %v580_v13  ;;  %v1276_v8 = vmov 7  }
 0x150   : > { %v1278_v10 = vmov 10   ;;  %v1281_v13 = vmov 14  }
 0x151   : > { %v620_v24 = vadd.f32 %v619_v19, %v618_v14  ;;  %v601_v25 = vadd.f32 %v600_v21, %v599_v16  ;;  %v585_v31 = vadd.f32 %v584_v23, %v564_v27  ;;  %v676_v18 = vld [vmem:[#allocation3 + $0x1] sm:$0xff] }
 0x152   : > { %v677_v19 = vld [vmem:[#allocation3 + $0x9] sm:$0xff] }
 0x153   : > { %v621_v28 = vrot.slane %v620_v24, 1  ;;  %v605_v29 = vmul.f32 %v989_v20, %v601_v25  ;;  %v665_v20 = vld [vmem:[#allocation3] sm:$0xff]  ;;  %v666_v21 = vld [vmem:[#allocation3 + $0x8] sm:$0xff] }
 0x154   : > { %v686_v23 = vld [vmem:[#allocation3 + $0x2] sm:$0xff]  ;;  %v816_v57 = vld [vmem:[#allocation3 + $0xf] sm:$0xff] }
 0x155   : > { %v622_v32 = vadd.f32 %v621_v28, %v620_v24  ;;  %v606_v33 = vadd.f32 %v605_v29, %v585_v31  ;;  %v687_v24 = vld [vmem:[#allocation3 + $0xa] sm:$0xff] }
 0x156   : > { %v696_v31 = vld [vmem:[#allocation3 + $0x3] sm:$0xff] }
 0x157   : > { %v626_v34 = vmul.f32 %v990_v30, %v622_v32  ;;  %v697_v32 = vld [vmem:[#allocation3 + $0xb] sm:$0xff] }
 0x159   : > { %v627_v35 = vadd.f32 %v626_v34, %v606_v33 }
 0x15b   : > { %v628_v36 = vmul.f32 0.03125, %v627_v35  ;;  %v706_v35 = vld [vmem:[#allocation3 + $0x4] sm:$0xff] }
 0x15d   : > { %v630_v37 = vsel %vm629_vm2, %v628_v36, -inf }
 0x15e   : > { %631 = vmax.xlane.f32.xlu0 %v630_v37 }
 0x1eb   : > { %v632_v3 = vpop.xlane.xlu0 %631 }
 0x1ec   : > { %vm633_vm3 = vcmp.ge.f32.partialorder %v628_v36, %v632_v3 }
 0x1ed   : > { %v634_v39 = vsel %vm633_vm3, %v283_v38, 16.0 }
 0x1ee   : > { %v635_v2 = vsel %vm629_vm2, %v634_v39, inf  ;;  %v786_v39 = vld [vmem:[#allocation3 + $0xc] sm:$0xff] }
 0x1ef   : > { %636 = vmin.xlane.f32.xlu1 %v635_v2  ;;  %v716_v2 = vld [vmem:[#allocation3 + $0x5] sm:$0xff] }
 0x27c   : > { %v637_v40 = vpop.xlane.xlu1 %636 }
 0x27d   : > { %vm638_vm4 = vcmp.eq.f32.partialorder %v283_v38, %v637_v40  ;;  %v717_v40 = vld [vmem:[#allocation3 + $0xd] sm:$0xff] }
 0x27e   : > { %v639_v41 = vsel %vm638_vm4, -1e+30, %v628_v36 }
 0x27f   : > { %v640_v42 = vsel %vm629_vm2, %v639_v41, -inf }
 0x280   : > { %641 = vmax.xlane.f32.xlu0 %v640_v42 }
 0x30d   : > { %v642_v43 = vpop.xlane.xlu0 %641 }
 0x30e   : > { %vm643_vm5 = vcmp.ge.f32.partialorder %v639_v41, %v642_v43 }
 0x30f   : > { %v644_v44 = vsel %vm643_vm5, %v283_v38, 16.0 }
 0x310   : > { %v645_v45 = vsel %vm629_vm2, %v644_v44, inf }
 0x311   : > { %646 = vmin.xlane.f32.xlu1 %v645_v45 }
 0x39e   : > { %v647_v46 = vpop.xlane.xlu1 %646 }
 0x39f   : > { %vm648_vm6 = vcmp.eq.f32.partialorder %v283_v38, %v647_v46  ;;  %v726_v46 = vld [vmem:[#allocation3 + $0x6] sm:$0xff] }
 0x3a0   : > { %vm649_vm7 = vmor %vm638_vm4, %vm648_vm6 }
 0x3a1   : > { %v650_v5 = vsel %vm649_vm7, %v628_v36, -1e+30  ;;  %v991_v52 = vsel %vm649_vm7, 1.0, %v1265_v26 }
 0x3a2   : > { %v651_v47 = vsel %vm629_vm2, %v650_v5, -inf }
 0x3a3   : > { %652 = vmax.xlane.f32.xlu0 %v651_v47 }
 0x430   : > { %v653_v48 = vpop.xlane.xlu0 %652 }
 0x431   : > { %v654_v49 = vsub.f32 %v650_v5, %v653_v48  ;;  %v727_v5 = vld [vmem:[#allocation3 + $0xe] sm:$0xff] }
 0x433   : > { %v655_v50 = vmul.f32 1.442695, %v654_v49 }
 0x435   : > { %1094 = vpow2.f32 %v655_v50 }
 0x43f   : > { %v1095_v51 = vpop.eup %1094 }
 0x440   : > { %v659_v53 = vmul.f32 %v1095_v51, %v991_v52  ;;  %v736_v51 = vld [vmem:[#allocation3 + $0x7] sm:$0xff] }
 0x442   : > { %v660_v54 = vsel %vm629_vm2, %v659_v53, 0.0 }
 0x443   : > { %661 = vadd.xlane.f32.xlu1 %v660_v54 }
 0x4d0   : > { %v662_v26 = vpop.xlane.xlu1 %661 }
 0x4d1   : > { %1096 = vrcp.f32 %v662_v26 }
 0x4db   : > { %v1097_v59 = vpop.eup %1096 }
 0x4dc   : > { %v664_v60 = vmul.f32 %v1097_v59, %v659_v53 }
 0x4de   : > { %679 = vperm.xlu1 %1079, %v664_v60   ;;  %669 = vperm.xlu0 %1078, %v664_v60  }
 0x4e2   : > { %1080 = vset.pattern.permute.xlu1 %v1268_v61  ;;  %1087 = vset.pattern.permute.xlu0 %v1269_v62  ;;  %v747_v61 = vld [vmem:[#allocation3 + $0x10] sm:$0xff] }
 0x4e3   : > { %689 = vperm.xlu1 %1080, %v664_v60   ;;  %759 = vperm.xlu0 %1087, %v664_v60  }
 0x4e7   : > { %1081 = vset.pattern.permute.xlu1 %v1270_v63  ;;  %1090 = vset.pattern.permute.xlu0 %v1271_v0 }
 0x4e8   : > { %699 = vperm.xlu1 %1081, %v664_v60   ;;  %789 = vperm.xlu0 %1090, %v664_v60  }
 0x4ec   : > { %1082 = vset.pattern.permute.xlu1 %v1272_v1  ;;  %1093 = vset.pattern.permute.xlu0 %v1273_v4 }
 0x4ed   : > { %709 = vperm.xlu1 %1082, %v664_v60   ;;  %819 = vperm.xlu0 %1093, %v664_v60  }
 0x4f1   : > { %1083 = vset.pattern.permute.xlu1 %v1274_v6 }
 0x4f2   : > { %719 = vperm.xlu1 %1083, %v664_v60  }
 0x4f6   : > { %1084 = vset.pattern.permute.xlu1 %v1275_v7 }
 0x4f7   : > { %729 = vperm.xlu1 %1084, %v664_v60  }
 0x4fb   : > { %1085 = vset.pattern.permute.xlu1 %v1276_v8  ;;  %v757_v8 = vld [vmem:[#allocation3 + $0x11] sm:$0xff] }
 0x4fc   : > { %739 = vperm.xlu1 %1085, %v664_v60  }
 0x500   : > { %1086 = vset.pattern.permute.xlu1 %v1277_v9 }
 0x501   : > { %749 = vperm.xlu1 %1086, %v664_v60  }
 0x505   : > { %1088 = vset.pattern.permute.xlu1 %v1278_v10 }
 0x506   : > { %769 = vperm.xlu1 %1088, %v664_v60  }
 0x50a   : > { %1089 = vset.pattern.permute.xlu1 %v1279_v11 }
 0x50b   : > { %779 = vperm.xlu1 %1089, %v664_v60  }
 0x50f   : > { %1091 = vset.pattern.permute.xlu1 %v1280_v12  ;;  %v767_v12 = vld [vmem:[#allocation3 + $0x12] sm:$0xff] }
 0x510   : > { %799 = vperm.xlu1 %1091, %v664_v60  }
 0x514   : > { %1092 = vset.pattern.permute.xlu1 %v1281_v13 }
 0x515   : > { %809 = vperm.xlu1 %1092, %v664_v60  }
 0x55d   : > { %v680_v14 = vpop.permute.xlu1 %679  ;;  %v670_v22 = vpop.permute.xlu0 %669 }
 0x55e   : > { %v682_v25 = vmul.f32 %v680_v14, %v676_v18  ;;  %v683_v27 = vmul.f32 %v680_v14, %v677_v19  ;;  %v672_v28 = vmul.f32 %v670_v22, %v665_v20  ;;  %v673_v29 = vmul.f32 %v670_v22, %v666_v21  ;;  %v777_v22 = vld [vmem:[#allocation3 + $0x13] sm:$0xff] }
 0x560   : > { %v684_v36 = vadd.f32 %v682_v25, %v672_v28  ;;  %v685_v37 = vadd.f32 %v683_v27, %v673_v29 }
 0x562   : > { %v690_v15 = vpop.permute.xlu1 %689  ;;  %v760_v9 = vpop.permute.xlu0 %759 }
 0x563   : > { %v692_v33 = vmul.f32 %v690_v15, %v686_v23  ;;  %v693_v34 = vmul.f32 %v690_v15, %v687_v24  ;;  %v762_v13 = vmul.f32 %v760_v9, %v677_v19  ;;  %v763_v14 = vmul.f32 %v760_v9, %v757_v8 }
 0x565   : > { %v694_v42 = vadd.f32 %v692_v33, %v684_v36  ;;  %v695_v43 = vadd.f32 %v693_v34, %v685_v37  ;;  %v797_v34 = vld [vmem:[#allocation3 + $0x15] sm:$0xff] }
 0x567   : > { %v700_v16 = vpop.permute.xlu1 %699 }
 0x568   : > { %v702_v38 = vmul.f32 %v700_v16, %v696_v31  ;;  %v703_v3 = vmul.f32 %v700_v16, %v697_v32 }
 0x56a   : > { %v704_v47 = vadd.f32 %v702_v38, %v694_v42  ;;  %v705_v48 = vadd.f32 %v703_v3, %v695_v43 }
 0x56c   : > { %v710_v17 = vpop.permute.xlu1 %709 }
 0x56d   : > { %v712_v44 = vmul.f32 %v710_v17, %v706_v35  ;;  %v713_v45 = vmul.f32 %v786_v39, %v710_v17 }
 0x56f   : > { %v714_v52 = vadd.f32 %v712_v44, %v704_v47  ;;  %v715_v53 = vadd.f32 %v713_v45, %v705_v48 }
 0x571   : > { %v720_v30 = vpop.permute.xlu1 %719 }
 0x572   : > { %v722_v49 = vmul.f32 %v720_v30, %v716_v2  ;;  %v723_v50 = vmul.f32 %v720_v30, %v717_v40  ;;  %v790_v30 = vpop.permute.xlu0 %789  ;;  %v807_v2 = vld [vmem:[#allocation3 + $0x16] sm:$0xff] }
 0x573   : > { %v792_v35 = vmul.f32 %v790_v30, %v786_v39 }
 0x574   : > { %v724_v58 = vadd.f32 %v722_v49, %v714_v52  ;;  %v725_v26 = vadd.f32 %v723_v50, %v715_v53 }
 0x576   : > { %v730_v41 = vpop.permute.xlu1 %729  ;;  %v820_v42 = vpop.permute.xlu0 %819 }
 0x577   : > { %v732_v54 = vmul.f32 %v730_v41, %v726_v46  ;;  %v733_v55 = vmul.f32 %v730_v41, %v727_v5  ;;  %v817_v41 = vld [vmem:[#allocation3 + $0x17] sm:$0xff]  ;;  %v822_v39 = vmul.f32 %v820_v42, %v816_v57 }
 0x578   : > { %v823_v47 = vmul.f32 %v820_v42, %v817_v41 }
 0x579   : > { %v734_v62 = vadd.f32 %v732_v54, %v724_v58  ;;  %v735_v63 = vadd.f32 %v733_v55, %v725_v26 }
 0x57b   : > { %v740_v56 = vpop.permute.xlu1 %739 }
 0x57c   : > { %v742_v59 = vmul.f32 %v740_v56, %v736_v51  ;;  %v743_v60 = vmul.f32 %v816_v57, %v740_v56 }
 0x57e   : > { %v744_v1 = vadd.f32 %v742_v59, %v734_v62  ;;  %v745_v4 = vadd.f32 %v743_v60, %v735_v63 }
 0x580   : > { %v750_v0 = vpop.permute.xlu1 %749 }
 0x581   : > { %v752_v6 = vmul.f32 %v750_v0, %v666_v21  ;;  %v753_v7 = vmul.f32 %v750_v0, %v747_v61  ;;  %v787_v21 = vld [vmem:[#allocation3 + $0x14] sm:$0xff] }
 0x582   : > { %v793_v19 = vmul.f32 %v790_v30, %v787_v21 }
 0x583   : > { %v754_v10 = vadd.f32 %v752_v6, %v744_v1  ;;  %v755_v11 = vadd.f32 %v753_v7, %v745_v4 }
 0x585   : > { %v770_v15 = vpop.permute.xlu1 %769  ;;  %v764_v16 = vadd.f32 %v762_v13, %v754_v10  ;;  %v765_v17 = vadd.f32 %v763_v14, %v755_v11 }
 0x586   : > { %v772_v18 = vmul.f32 %v770_v15, %v687_v24  ;;  %v773_v20 = vmul.f32 %v770_v15, %v767_v12 }
 0x588   : > { %v774_v25 = vadd.f32 %v772_v18, %v764_v16  ;;  %v775_v27 = vadd.f32 %v773_v20, %v765_v17 }
 0x58a   : > { %v780_v23 = vpop.permute.xlu1 %779 }
 0x58b   : > { %v782_v28 = vmul.f32 %v780_v23, %v697_v32  ;;  %v783_v29 = vmul.f32 %v780_v23, %v777_v22 }
 0x58d   : > { %v784_v31 = vadd.f32 %v782_v28, %v774_v25  ;;  %v785_v33 = vadd.f32 %v783_v29, %v775_v27 }
 0x58f   : > { %v800_v36 = vpop.permute.xlu1 %799  ;;  %v794_v37 = vadd.f32 %v792_v35, %v784_v31  ;;  %v795_v38 = vadd.f32 %v793_v19, %v785_v33 }
 0x590   : > { %v802_v24 = vmul.f32 %v800_v36, %v717_v40  ;;  %v803_v3 = vmul.f32 %v800_v36, %v797_v34 }
 0x592   : > { %v804_v32 = vadd.f32 %v802_v24, %v794_v37  ;;  %v805_v44 = vadd.f32 %v803_v3, %v795_v38 }
 0x594   : > { %v810_v43 = vpop.permute.xlu1 %809 }
 0x595   : > { %v812_v45 = vmul.f32 %v810_v43, %v727_v5  ;;  %v813_v46 = vmul.f32 %v810_v43, %v807_v2 }
 0x597   : > { %v814_v48 = vadd.f32 %v812_v45, %v804_v32  ;;  %v815_v49 = vadd.f32 %v813_v46, %v805_v44 }
 0x599   : > { %v824_v40 = vadd.f32 %v822_v39, %v814_v48  ;;  %v825_v5 = vadd.f32 %v823_v47, %v815_v49 }
 0x59b   : > { %826 = vst.msk [vmem:[%s265_s4] sm:$0xff] %vm272_vm0, %v824_v40  ;;  %827 = vst.msk [vmem:[%s265_s4 + $0x8] sm:$0xff] %vm272_vm0, %v825_v5 }
 0x59c   : > { %1201 = shalt.err (!%p1198_p10)
}
 0x59d   : > { %s1202_s20 = scalar_lea.hbm %s1676_s5, 256  ;;  %s1206_s9 = scalar_lea.hbm %s1727_s3, 512 }
 0x59e   : > { %p1203_p11 = scmp.ne.s32.totalorder %s1676_s5, %s1202_s20  ;;  %p1207_p5 = scmp.lt.u32.totalorder %s1676_s5, %s1727_s3 }
 0x59f   : > { %p1208_p2 = scmp.lt.u32.totalorder %s1206_s9, %s1202_s20  ;;  %p1210_p13 = scmp.lt.u32.totalorder %s1202_s20, %s1676_s5 }
 0x5a0   : > { %p1204_p4 = pnand %p1203_p11, %p1747_p7 }
 0x5a1   : > { %p1209_p1 = por %p1208_p2, %p1207_p5 }
 0x5a2   : > { %p1205_p3 = pneg %p1204_p4 }
 0x5a3   : > { %p1211_p6 = por %p1210_p13, %p1209_p1 }
 0x5a5   : > { %p1212_p9 = pnand %p1211_p6, %p1205_p3 }
 0x5a7   : > { %1215 = shalt.err (!%p1212_p9)
}
 0x5a8   : > { %s1283_s17 = smov 128   ;;  %s1284_s22 = smov 8  }
 0x5a9   : > { %1007 = dma.vmem_to_hbm [thread:$0]  (%p1747_p7), %s1678_s11, 256, %s1676_s5, %s829_s16, %s1283_s17, %s1283_s17, %s1284_s22  }
 0x5aa PF: > { %s857_s7 = sand.u32 1, %s1246_s12   ;;  %p1748_p12 = scmp.ne.s32.totalorder %s1737_s24, 0 }
 0x5ab   : > { %p1749_p0 = scmp.ge.s32.totalorder %s1258_s15, 2  ;;  %s858_s4 = scalar_lea.sflag [#allocation6], %s857_s7 }
 0x5ad   : > { %p1020_p8 = pnand %p1749_p0, %p1748_p12 }
 0x5af   : > { %1241 = dma.done.wait (!%p1020_p8), %s858_s4, 256  }
 0x5b0   : > { %1243 = vsyncadd (!%p1020_p8), %s858_s4, 4294967040  ;;  %p19_p10 = scmp.ge.s32.totalorder %s1330_s18, 4   ;;  %s1750_s12 = smov %s1250_s13 }
 0x5b1   : > { %s1751_s13 = smov %s1254_s14  ;;  %s1752_s14 = smov %s1342_s21 }
 0x5b2   : > { %s1753_s15 = smov %s1330_s18  ;;  %21 = sbr.rel (!%p19_p10) target bundleno = 9 (0x9), region = 101 }
 0x5b9   :  { %863 = vsyncpa [#allocation5], 1 }
 0x5ba   :  { %865 = vsyncpa [#allocation5 + $0x1], 1 }
 0x5bb   :  { %866 = vsyncpa [#allocation8], 1 }
 0x5bc   :  { %868 = vsyncpa [#allocation8 + $0x1], 1 }
 0x5bd   :  { %869 = vsyncpa [#allocation6], 1 }
 0x5be   :  { %871 = vsyncpa [#allocation6 + $0x1], 1 }

</bundles_post_ra>
